<compile_context>
chip_gen: v7x
topology: tpu7x:2x2x1
jax: 0.10.0
libtpu: 0.0.40
codegen_flags: <defaults>
</compile_context>

<pallas_src>
import functools

import jax
import jax.numpy as jnp
import numpy as np
from jax.experimental import pallas as pl
from jax.experimental.pallas import tpu as pltpu


def _fused_kernel(x_ref, w1_ref, w23_ref, bias_ref, alpha_ref, o_ref,
                  act1_ref, act2_ref, *,
                  BB, H, W, Cin, Cout, H1, W1, stride):
    """BB batch images: 3 x (3x3 conv + bias + PReLU), fully in VMEM.

    x_ref:     (BB, H, W*Cin)            lane-packed input (w*Cin + ci)
    w1_ref:    (3, W*Cin,  W1*Cout)      banded weights, layer 1 (width stride folded)
    w23_ref:   (2, 3, W1*Cout, W1*Cout)  banded weights, layers 2 & 3
    bias_ref:  (3, W1*Cout)  f32         per-layer bias, lane-packed
    alpha_ref: (3, W1*Cout)  f32         per-layer PReLU slope, lane-packed
    o_ref:     (BB, H1, W1*Cout)         lane-packed output (w*Cout + co)
    act1_ref:  VMEM (BB*(H+2),  W*Cin)   stacked layer-1 input (zero row halos)
    act2_ref:  VMEM (BB*(H1+2), W1*Cout) stacked layer-2/3 input (zero row halos)
    """
    S1 = H + 2                      # per-image segment height in act1
    S2 = H1 + 2                     # per-image segment height in act2
    M1 = BB * S1 - 2                # matmul M for layer 1
    M2 = BB * S2 - 2                # matmul M for layers 2/3
    cdt = act2_ref.dtype            # compute dtype (dot inputs)

    # ---- zero ONLY the halo rows (never overwritten; interiors are fully
    # rewritten every step, so no full-scratch zeroing).  Safe under megacore:
    # nothing is gated on program_id.
    zrow1 = jnp.zeros((1, W * Cin), act1_ref.dtype)
    zrow2 = jnp.zeros((1, W1 * Cout), act2_ref.dtype)
    for b in range(BB):
        act1_ref[b * S1:b * S1 + 1, :] = zrow1                  # top halo
        act1_ref[b * S1 + H + 1:b * S1 + H + 2, :] = zrow1      # bottom halo
        act2_ref[b * S2:b * S2 + 1, :] = zrow2
        act2_ref[b * S2 + H1 + 1:b * S2 + H1 + 2, :] = zrow2

    # ---- place the BB input images into act1's interiors.  The cast to the
    # compute dtype happens here, so in bf16 mode this copy doubles as the
    # (otherwise required) f32->bf16 conversion of the activations.
    for b in range(BB):
        act1_ref[b * S1 + 1:b * S1 + 1 + H, :] = x_ref[b].astype(act1_ref.dtype)

    def conv3x3(src_ref, n_rows, w_of_kh, layer):
        # 3 matmuls (one per kernel row); kw taps + width stride are folded
        # into the banded RHS.  Accumulate in f32; elementwise stays f32.
        acc = None
        for kh in range(3):
            lhs = src_ref[kh:kh + n_rows, :]
            part = jnp.dot(lhs, w_of_kh(kh), preferred_element_type=jnp.float32)
            acc = part if acc is None else acc + part
        y = acc + bias_ref[layer:layer + 1, :]
        return jnp.where(y >= 0.0, y, alpha_ref[layer:layer + 1, :] * y)  # PReLU

    # ---- layer 1 ----
    y = conv3x3(act1_ref, M1, lambda kh: w1_ref[kh], 0)
    for b in range(BB):
        src0 = b * S1                 # valid result rows of image b start here
        dst0 = b * S2 + 1             # interior of image b in act2
        if stride == 1:
            rows = y[src0:src0 + H1, :]
        else:
            # TODO(synk): stride>1 height path is correct but untuned (value
            #   strided slice => XLU relayout) and not covered by the test.
            rows = y[src0:src0 + (H1 - 1) * stride + 1:stride, :]
        act2_ref[dst0:dst0 + H1, :] = rows.astype(cdt)

    # ---- layer 2 (activation never leaves VMEM; halos of act2 stay zero) ----
    y = conv3x3(act2_ref, M2, lambda kh: w23_ref[0, kh], 1)
    for b in range(BB):
        dst0 = b * S2 + 1
        act2_ref[dst0:dst0 + H1, :] = y[dst0 - 1:dst0 - 1 + H1, :].astype(cdt)

    # ---- layer 3: lane-dense store straight to the output block ----
    y = conv3x3(act2_ref, M2, lambda kh: w23_ref[1, kh], 2)
    for b in range(BB):
        src0 = b * S2
        o_ref[b] = y[src0:src0 + H1, :].astype(o_ref.dtype)


def _banded_weights(w_hwio, w_in, w_out, stride):
    """Fold the kw taps (and width stride) of a 3x3 conv into a matmul RHS.

    Returns B[kh, w_idx*Cin + ci, w*Cout + co] = w_hwio[kh, kw, ci, co] when
    the *unpadded* input column w_idx sits at padded position stride*w + kw,
    else 0.  Zero-pad columns contribute nothing, so they are simply dropped
    (K = w_in*Cin, no width halo needed in the activation scratch).
    """
    cin, cout = w_hwio.shape[2], w_hwio.shape[3]
    pw = 1 + jnp.arange(w_in)                                   # padded position
    sel = (pw[:, None, None] ==
           stride * jnp.arange(w_out)[None, :, None]
           + jnp.arange(3)[None, None, :]).astype(w_hwio.dtype)  # (Win, Wout, 3)
    b = jnp.einsum("pwk,hkio->hpiwo", sel, w_hwio)   # (3, Win, Cin, Wout, Cout)
    return b.reshape(3, w_in * cin, w_out * cout)


def _pick_batch_block(n_batch, h):
    """Largest divisor of the batch whose stacked-row count keeps the matmul
    M around 64-128 rows (feeds the MXU without spilling the f32 accumulator)."""
    row_target = 80
    cap = max(1, (row_target + 2) // (h + 2))
    bb = 1
    for d in range(1, min(n_batch, cap) + 1):
        if n_batch % d == 0:
            bb = d
    return bb


def triple_conv_pr_fused(x_nhwc, params, stride=1, compute_dtype=jnp.float32):
    """x_nhwc: (N, H, W, Cin) -> (N, H1, W1, Cout), lane-packed NHWC."""
    (w1, b1, a1), (w2, b2, a2), (w3, b3, a3) = params
    N, H, W, Cin = x_nhwc.shape
    Cout = w1.shape[-1]
    H1 = (H - 1) // stride + 1
    W1 = (W - 1) // stride + 1

    # Lane-packed input (contiguous reshape, no extra HBM pass).
    x_packed = x_nhwc.reshape(N, H, W * Cin)

    # Banded weights (kw + width stride folded in, no halo columns).
    w1b = _banded_weights(w1, W, W1, stride).astype(compute_dtype)
    w23b = jnp.stack([_banded_weights(w2, W1, W1, 1),
                      _banded_weights(w3, W1, W1, 1)]).astype(compute_dtype)
    # Bias / PReLU slopes stay f32 (elementwise math in f32; v5e-safe).
    bias_p = jnp.stack([jnp.tile(b, W1) for b in (b1, b2, b3)]).astype(jnp.float32)
    alpha_p = jnp.stack([jnp.tile(a, W1) for a in (a1, a2, a3)]).astype(jnp.float32)

    BB = _pick_batch_block(N, H)
    kernel = functools.partial(_fused_kernel, BB=BB, H=H, W=W, Cin=Cin,
                               Cout=Cout, H1=H1, W1=W1, stride=stride)

    out_packed = pl.pallas_call(
        kernel,
        out_shape=jax.ShapeDtypeStruct((N, H1, W1 * Cout), x_nhwc.dtype),
        grid=(N // BB,),
        in_specs=[
            pl.BlockSpec((BB, H, W * Cin), lambda n: (n, 0, 0)),
            pl.BlockSpec((3, W * Cin, W1 * Cout), lambda n: (0, 0, 0)),
            pl.BlockSpec((2, 3, W1 * Cout, W1 * Cout), lambda n: (0, 0, 0, 0)),
            pl.BlockSpec((3, W1 * Cout), lambda n: (0, 0)),
            pl.BlockSpec((3, W1 * Cout), lambda n: (0, 0)),
        ],
        out_specs=pl.BlockSpec((BB, H1, W1 * Cout), lambda n: (n, 0, 0)),
        scratch_shapes=[
            pltpu.VMEM((BB * (H + 2), W * Cin), compute_dtype),
            pltpu.VMEM((BB * (H1 + 2), W1 * Cout), compute_dtype),
        ],
        compiler_params=pltpu.CompilerParams(
            dimension_semantics=("parallel",),
            vmem_limit_bytes=32 * 1024 * 1024),
    )(x_packed, w1b, w23b, bias_p, alpha_p)

    return out_packed.reshape(N, H1, W1, Cout)


def init_triple_conv_pr(key, in_channels, out_channels):
    """Deterministic parameter init mirroring the nn.Module's shapes."""
    params = []
    cin = in_channels
    for _ in range(3):
        key, kw, kb, ka = jax.random.split(key, 4)
        fan_in = cin * 9
        w = jax.random.normal(kw, (3, 3, cin, out_channels),
                              jnp.float32) * (1.0 / np.sqrt(fan_in))
        b = jax.random.normal(kb, (out_channels,), jnp.float32) * 0.05
        a = 0.25 + 0.1 * jax.random.uniform(ka, (out_channels,), jnp.float32)
        params.append((w, b, a))
        cin = out_channels
    return params


@functools.partial(jax.jit, static_argnames=("stride", "compute_dtype"))
def triple_conv_pr_nhwc(x_nhwc, params, stride=1, compute_dtype=jnp.float32):
    """NHWC end-to-end entry point (no layout transposes) - preferred."""
    return triple_conv_pr_fused(x_nhwc, params, stride=stride,
                                compute_dtype=compute_dtype)


@functools.partial(jax.jit, static_argnames=("stride", "compute_dtype"))
def triple_conv_pr(x_nchw, params, stride=1, compute_dtype=jnp.float32):
    """PyTorch-compatible NCHW wrapper.  The two transposes are extra HBM
    passes; keep the model NHWC end-to-end (triple_conv_pr_nhwc) to avoid them."""
    y = jnp.transpose(x_nchw, (0, 2, 3, 1))          # NCHW -> NHWC
    y = triple_conv_pr_fused(y, params, stride=stride, compute_dtype=compute_dtype)
    return jnp.transpose(y, (0, 3, 1, 2))            # NHWC -> NCHW


def ref_triple_conv_pr(x_nchw, params, stride=1):
    """Pure-JAX reference (lax conv) for correctness check."""
    y = x_nchw
    strides = (stride, 1, 1)
    for (w, b, a), s in zip(params, strides):
        y = jax.lax.conv_general_dilated(
            y, w, window_strides=(s, s), padding=((1, 1), (1, 1)),
            dimension_numbers=("NCHW", "HWIO", "NCHW"))
        y = y + b[None, :, None, None]
        y = jnp.where(y >= 0, y, a[None, :, None, None] * y)
    return y


if __name__ == "__main__":
    key = jax.random.PRNGKey(0)
    k_x, k_p = jax.random.split(key)

    N, Cin, H, W = 2, 4, 16, 16
    Cout = 8
    x = jax.random.normal(k_x, (N, Cin, H, W), jnp.float32)
    params = init_triple_conv_pr(k_p, Cin, Cout)

    ref = ref_triple_conv_pr(x, params, stride=1)

    # f32 path (tight correctness check).
    out = triple_conv_pr(x, params, stride=1)
    out = jax.block_until_ready(out)
    np.testing.assert_allclose(np.asarray(out), np.asarray(ref),
                               rtol=1e-3, atol=1e-3)
    assert out.shape == (N, Cout, H, W)

    # bf16 MXU path (v6e/v7x throughput): same kernel, bf16 dot inputs,
    # f32 accumulation + f32 elementwise; loose tolerance by construction.
    out_bf16 = triple_conv_pr(x, params, stride=1, compute_dtype=jnp.bfloat16)
    out_bf16 = jax.block_until_ready(out_bf16)
    np.testing.assert_allclose(np.asarray(out_bf16), np.asarray(ref),
                               rtol=1e-1, atol=1e-1)

    print("KERNEL_OK")
</pallas_src>

<mosaic_0001>
module attributes {stable_mosaic.version = 11 : i64} {
  func.func @_fused_kernel(%arg0: i32, %arg1: memref<2x16x64xf32, #tpu.memory_space<vmem>>, %arg2: memref<3x64x128xf32, #tpu.memory_space<vmem>>, %arg3: memref<2x3x128x128xf32, #tpu.memory_space<vmem>>, %arg4: memref<3x128xf32, #tpu.memory_space<vmem>>, %arg5: memref<3x128xf32, #tpu.memory_space<vmem>>, %arg6: memref<2x16x128xf32, #tpu.memory_space<vmem>>, %arg7: memref<36x64xf32, #tpu.memory_space<vmem>>, %arg8: memref<36x128xf32, #tpu.memory_space<vmem>>) attributes {dimension_semantics = [#tpu.dimension_semantics<parallel>], iteration_bounds = array<i64: 1>, scalar_prefetch = 0 : i64, scratch_operands = 2 : i64, tpu.core_type = #tpu.core_type<tc>, window_params = [{transform_indices = @transform_0, window_bounds = array<i64: 2, 16, 64>}, {pipeline_mode = #tpu.pipeline_mode<synchronous>, transform_indices = @transform_1, window_bounds = array<i64: 3, 64, 128>}, {pipeline_mode = #tpu.pipeline_mode<synchronous>, transform_indices = @transform_2, window_bounds = array<i64: 2, 3, 128, 128>}, {pipeline_mode = #tpu.pipeline_mode<synchronous>, transform_indices = @transform_3, window_bounds = array<i64: 3, 128>}, {pipeline_mode = #tpu.pipeline_mode<synchronous>, transform_indices = @transform_4, window_bounds = array<i64: 3, 128>}, {transform_indices = @transform_5, window_bounds = array<i64: 2, 16, 128>}]} {
    %cst = arith.constant 0.000000e+00 : f32
    %0 = vector.broadcast %cst : f32 to vector<1x64xf32>
    %cst_0 = arith.constant 0.000000e+00 : f32
    %1 = vector.broadcast %cst_0 : f32 to vector<1x128xf32>
    %c0 = arith.constant 0 : index
    %c0_1 = arith.constant 0 : index
    %2 = vector.load %arg7[%c0, %c0_1] : memref<36x64xf32, #tpu.memory_space<vmem>>, vector<1x64xf32>
    tpu.vector_store %arg7[%c0, %c0_1], %0 {strides = array<i32>} : memref<36x64xf32, #tpu.memory_space<vmem>>, vector<1x64xf32>,
    %c17 = arith.constant 17 : index
    %c0_2 = arith.constant 0 : index
    %3 = vector.load %arg7[%c17, %c0_2] : memref<36x64xf32, #tpu.memory_space<vmem>>, vector<1x64xf32>
    tpu.vector_store %arg7[%c17, %c0_2], %0 {strides = array<i32>} : memref<36x64xf32, #tpu.memory_space<vmem>>, vector<1x64xf32>,
    %c0_3 = arith.constant 0 : index
    %c0_4 = arith.constant 0 : index
    %4 = vector.load %arg8[%c0_3, %c0_4] : memref<36x128xf32, #tpu.memory_space<vmem>>, vector<1x128xf32>
    tpu.vector_store %arg8[%c0_3, %c0_4], %1 {strides = array<i32>} : memref<36x128xf32, #tpu.memory_space<vmem>>, vector<1x128xf32>,
    %c17_5 = arith.constant 17 : index
    %c0_6 = arith.constant 0 : index
    %5 = vector.load %arg8[%c17_5, %c0_6] : memref<36x128xf32, #tpu.memory_space<vmem>>, vector<1x128xf32>
    tpu.vector_store %arg8[%c17_5, %c0_6], %1 {strides = array<i32>} : memref<36x128xf32, #tpu.memory_space<vmem>>, vector<1x128xf32>,
    %c18 = arith.constant 18 : index
    %c0_7 = arith.constant 0 : index
    %6 = vector.load %arg7[%c18, %c0_7] : memref<36x64xf32, #tpu.memory_space<vmem>>, vector<1x64xf32>
    tpu.vector_store %arg7[%c18, %c0_7], %0 {strides = array<i32>} : memref<36x64xf32, #tpu.memory_space<vmem>>, vector<1x64xf32>,
    %c35 = arith.constant 35 : index
    %c0_8 = arith.constant 0 : index
    %7 = vector.load %arg7[%c35, %c0_8] : memref<36x64xf32, #tpu.memory_space<vmem>>, vector<1x64xf32>
    tpu.vector_store %arg7[%c35, %c0_8], %0 {strides = array<i32>} : memref<36x64xf32, #tpu.memory_space<vmem>>, vector<1x64xf32>,
    %c18_9 = arith.constant 18 : index
    %c0_10 = arith.constant 0 : index
    %8 = vector.load %arg8[%c18_9, %c0_10] : memref<36x128xf32, #tpu.memory_space<vmem>>, vector<1x128xf32>
    tpu.vector_store %arg8[%c18_9, %c0_10], %1 {strides = array<i32>} : memref<36x128xf32, #tpu.memory_space<vmem>>, vector<1x128xf32>,
    %c35_11 = arith.constant 35 : index
    %c0_12 = arith.constant 0 : index
    %9 = vector.load %arg8[%c35_11, %c0_12] : memref<36x128xf32, #tpu.memory_space<vmem>>, vector<1x128xf32>
    tpu.vector_store %arg8[%c35_11, %c0_12], %1 {strides = array<i32>} : memref<36x128xf32, #tpu.memory_space<vmem>>, vector<1x128xf32>,
    %c0_13 = arith.constant 0 : index
    %c0_14 = arith.constant 0 : index
    %c0_15 = arith.constant 0 : index
    %10 = vector.load %arg1[%c0_13, %c0_14, %c0_15] : memref<2x16x64xf32, #tpu.memory_space<vmem>>, vector<1x16x64xf32>
    %11 = vector.shape_cast %10 : vector<1x16x64xf32> to vector<16x64xf32>
    %c1 = arith.constant 1 : index
    %c0_16 = arith.constant 0 : index
    %12 = vector.load %arg7[%c1, %c0_16] : memref<36x64xf32, #tpu.memory_space<vmem>>, vector<16x64xf32>
    tpu.vector_store %arg7[%c1, %c0_16], %11 {strides = array<i32>} : memref<36x64xf32, #tpu.memory_space<vmem>>, vector<16x64xf32>,
    %c1_17 = arith.constant 1 : index
    %c0_18 = arith.constant 0 : index
    %c0_19 = arith.constant 0 : index
    %13 = vector.load %arg1[%c1_17, %c0_18, %c0_19] : memref<2x16x64xf32, #tpu.memory_space<vmem>>, vector<1x16x64xf32>
    %14 = vector.shape_cast %13 : vector<1x16x64xf32> to vector<16x64xf32>
    %c19 = arith.constant 19 : index
    %c0_20 = arith.constant 0 : index
    %15 = vector.load %arg7[%c19, %c0_20] : memref<36x64xf32, #tpu.memory_space<vmem>>, vector<16x64xf32>
    tpu.vector_store %arg7[%c19, %c0_20], %14 {strides = array<i32>} : memref<36x64xf32, #tpu.memory_space<vmem>>, vector<16x64xf32>,
    %c0_21 = arith.constant 0 : index
    %c0_22 = arith.constant 0 : index
    %16 = vector.load %arg7[%c0_21, %c0_22] : memref<36x64xf32, #tpu.memory_space<vmem>>, vector<34x64xf32>
    %c0_23 = arith.constant 0 : index
    %c0_24 = arith.constant 0 : index
    %c0_25 = arith.constant 0 : index
    %17 = vector.load %arg2[%c0_23, %c0_24, %c0_25] : memref<3x64x128xf32, #tpu.memory_space<vmem>>, vector<1x64x128xf32>
    %18 = vector.shape_cast %17 : vector<1x64x128xf32> to vector<64x128xf32>
    %cst_26 = arith.constant dense<0.000000e+00> : vector<34x128xf32>
    %19 = tpu.matmul %16, %18, %cst_26 {dimension_numbers = #tpu.dot_dimension_numbers<[1], [0], [0], [1], [0, 0, 1, 1], [], []>} : vector<34x64xf32>, vector<64x128xf32>, vector<34x128xf32> -> vector<34x128xf32>
    %c1_27 = arith.constant 1 : index
    %c0_28 = arith.constant 0 : index
    %20 = vector.load %arg7[%c1_27, %c0_28] : memref<36x64xf32, #tpu.memory_space<vmem>>, vector<34x64xf32>
    %c1_29 = arith.constant 1 : index
    %c0_30 = arith.constant 0 : index
    %c0_31 = arith.constant 0 : index
    %21 = vector.load %arg2[%c1_29, %c0_30, %c0_31] : memref<3x64x128xf32, #tpu.memory_space<vmem>>, vector<1x64x128xf32>
    %22 = vector.shape_cast %21 : vector<1x64x128xf32> to vector<64x128xf32>
    %cst_32 = arith.constant dense<0.000000e+00> : vector<34x128xf32>
    %23 = tpu.matmul %20, %22, %cst_32 {dimension_numbers = #tpu.dot_dimension_numbers<[1], [0], [0], [1], [0, 0, 1, 1], [], []>} : vector<34x64xf32>, vector<64x128xf32>, vector<34x128xf32> -> vector<34x128xf32>
    %24 = arith.addf %19, %23 : vector<34x128xf32>
    %c2 = arith.constant 2 : index
    %c0_33 = arith.constant 0 : index
    %25 = vector.load %arg7[%c2, %c0_33] : memref<36x64xf32, #tpu.memory_space<vmem>>, vector<34x64xf32>
    %c2_34 = arith.constant 2 : index
    %c0_35 = arith.constant 0 : index
    %c0_36 = arith.constant 0 : index
    %26 = vector.load %arg2[%c2_34, %c0_35, %c0_36] : memref<3x64x128xf32, #tpu.memory_space<vmem>>, vector<1x64x128xf32>
    %27 = vector.shape_cast %26 : vector<1x64x128xf32> to vector<64x128xf32>
    %cst_37 = arith.constant dense<0.000000e+00> : vector<34x128xf32>
    %28 = tpu.matmul %25, %27, %cst_37 {dimension_numbers = #tpu.dot_dimension_numbers<[1], [0], [0], [1], [0, 0, 1, 1], [], []>} : vector<34x64xf32>, vector<64x128xf32>, vector<34x128xf32> -> vector<34x128xf32>
    %29 = arith.addf %24, %28 : vector<34x128xf32>
    %c0_38 = arith.constant 0 : index
    %c0_39 = arith.constant 0 : index
    %30 = vector.load %arg4[%c0_38, %c0_39] : memref<3x128xf32, #tpu.memory_space<vmem>>, vector<1x128xf32>
    %31 = vector.broadcast %30 : vector<1x128xf32> to vector<34x128xf32>
    %32 = arith.addf %29, %31 : vector<34x128xf32>
    %cst_40 = arith.constant 0.000000e+00 : f32
    %33 = vector.broadcast %cst_40 : f32 to vector<34x128xf32>
    %34 = arith.cmpf oge, %32, %33 : vector<34x128xf32>
    %c0_41 = arith.constant 0 : index
    %c0_42 = arith.constant 0 : index
    %35 = vector.load %arg5[%c0_41, %c0_42] : memref<3x128xf32, #tpu.memory_space<vmem>>, vector<1x128xf32>
    %36 = vector.broadcast %35 : vector<1x128xf32> to vector<34x128xf32>
    %37 = arith.mulf %36, %32 : vector<34x128xf32>
    %38 = arith.select %34, %32, %37 : vector<34x128xi1>, vector<34x128xf32>
    %39 = vector.extract_strided_slice %38 {offsets = [0, 0], sizes = [16, 128], strides = [1, 1]} : vector<34x128xf32> to vector<16x128xf32>
    %c1_43 = arith.constant 1 : index
    %c0_44 = arith.constant 0 : index
    %40 = vector.load %arg8[%c1_43, %c0_44] : memref<36x128xf32, #tpu.memory_space<vmem>>, vector<16x128xf32>
    tpu.vector_store %arg8[%c1_43, %c0_44], %39 {strides = array<i32>} : memref<36x128xf32, #tpu.memory_space<vmem>>, vector<16x128xf32>,
    %41 = vector.extract_strided_slice %38 {offsets = [18, 0], sizes = [16, 128], strides = [1, 1]} : vector<34x128xf32> to vector<16x128xf32>
    %c19_45 = arith.constant 19 : index
    %c0_46 = arith.constant 0 : index
    %42 = vector.load %arg8[%c19_45, %c0_46] : memref<36x128xf32, #tpu.memory_space<vmem>>, vector<16x128xf32>
    tpu.vector_store %arg8[%c19_45, %c0_46], %41 {strides = array<i32>} : memref<36x128xf32, #tpu.memory_space<vmem>>, vector<16x128xf32>,
    %c0_47 = arith.constant 0 : index
    %c0_48 = arith.constant 0 : index
    %43 = vector.load %arg8[%c0_47, %c0_48] : memref<36x128xf32, #tpu.memory_space<vmem>>, vector<34x128xf32>
    %c0_49 = arith.constant 0 : index
    %c0_50 = arith.constant 0 : index
    %c0_51 = arith.constant 0 : index
    %c0_52 = arith.constant 0 : index
    %44 = vector.load %arg3[%c0_49, %c0_50, %c0_51, %c0_52] : memref<2x3x128x128xf32, #tpu.memory_space<vmem>>, vector<1x1x128x128xf32>
    %45 = vector.shape_cast %44 : vector<1x1x128x128xf32> to vector<128x128xf32>
    %cst_53 = arith.constant dense<0.000000e+00> : vector<34x128xf32>
    %46 = tpu.matmul %43, %45, %cst_53 {dimension_numbers = #tpu.dot_dimension_numbers<[1], [0], [0], [1], [0, 0, 1, 1], [], []>} : vector<34x128xf32>, vector<128x128xf32>, vector<34x128xf32> -> vector<34x128xf32>
    %c1_54 = arith.constant 1 : index
    %c0_55 = arith.constant 0 : index
    %47 = vector.load %arg8[%c1_54, %c0_55] : memref<36x128xf32, #tpu.memory_space<vmem>>, vector<34x128xf32>
    %c0_56 = arith.constant 0 : index
    %c1_57 = arith.constant 1 : index
    %c0_58 = arith.constant 0 : index
    %c0_59 = arith.constant 0 : index
    %48 = vector.load %arg3[%c0_56, %c1_57, %c0_58, %c0_59] : memref<2x3x128x128xf32, #tpu.memory_space<vmem>>, vector<1x1x128x128xf32>
    %49 = vector.shape_cast %48 : vector<1x1x128x128xf32> to vector<128x128xf32>
    %cst_60 = arith.constant dense<0.000000e+00> : vector<34x128xf32>
    %50 = tpu.matmul %47, %49, %cst_60 {dimension_numbers = #tpu.dot_dimension_numbers<[1], [0], [0], [1], [0, 0, 1, 1], [], []>} : vector<34x128xf32>, vector<128x128xf32>, vector<34x128xf32> -> vector<34x128xf32>
    %51 = arith.addf %46, %50 : vector<34x128xf32>
    %c2_61 = arith.constant 2 : index
    %c0_62 = arith.constant 0 : index
    %52 = vector.load %arg8[%c2_61, %c0_62] : memref<36x128xf32, #tpu.memory_space<vmem>>, vector<34x128xf32>
    %c0_63 = arith.constant 0 : index
    %c2_64 = arith.constant 2 : index
    %c0_65 = arith.constant 0 : index
    %c0_66 = arith.constant 0 : index
    %53 = vector.load %arg3[%c0_63, %c2_64, %c0_65, %c0_66] : memref<2x3x128x128xf32, #tpu.memory_space<vmem>>, vector<1x1x128x128xf32>
    %54 = vector.shape_cast %53 : vector<1x1x128x128xf32> to vector<128x128xf32>
    %cst_67 = arith.constant dense<0.000000e+00> : vector<34x128xf32>
    %55 = tpu.matmul %52, %54, %cst_67 {dimension_numbers = #tpu.dot_dimension_numbers<[1], [0], [0], [1], [0, 0, 1, 1], [], []>} : vector<34x128xf32>, vector<128x128xf32>, vector<34x128xf32> -> vector<34x128xf32>
    %56 = arith.addf %51, %55 : vector<34x128xf32>
    %c1_68 = arith.constant 1 : index
    %c0_69 = arith.constant 0 : index
    %57 = vector.load %arg4[%c1_68, %c0_69] : memref<3x128xf32, #tpu.memory_space<vmem>>, vector<1x128xf32>
    %58 = vector.broadcast %57 : vector<1x128xf32> to vector<34x128xf32>
    %59 = arith.addf %56, %58 : vector<34x128xf32>
    %cst_70 = arith.constant 0.000000e+00 : f32
    %60 = vector.broadcast %cst_70 : f32 to vector<34x128xf32>
    %61 = arith.cmpf oge, %59, %60 : vector<34x128xf32>
    %c1_71 = arith.constant 1 : index
    %c0_72 = arith.constant 0 : index
    %62 = vector.load %arg5[%c1_71, %c0_72] : memref<3x128xf32, #tpu.memory_space<vmem>>, vector<1x128xf32>
    %63 = vector.broadcast %62 : vector<1x128xf32> to vector<34x128xf32>
    %64 = arith.mulf %63, %59 : vector<34x128xf32>
    %65 = arith.select %61, %59, %64 : vector<34x128xi1>, vector<34x128xf32>
    %66 = vector.extract_strided_slice %65 {offsets = [0, 0], sizes = [16, 128], strides = [1, 1]} : vector<34x128xf32> to vector<16x128xf32>
    %c1_73 = arith.constant 1 : index
    %c0_74 = arith.constant 0 : index
    %67 = vector.load %arg8[%c1_73, %c0_74] : memref<36x128xf32, #tpu.memory_space<vmem>>, vector<16x128xf32>
    tpu.vector_store %arg8[%c1_73, %c0_74], %66 {strides = array<i32>} : memref<36x128xf32, #tpu.memory_space<vmem>>, vector<16x128xf32>,
    %68 = vector.extract_strided_slice %65 {offsets = [18, 0], sizes = [16, 128], strides = [1, 1]} : vector<34x128xf32> to vector<16x128xf32>
    %c19_75 = arith.constant 19 : index
    %c0_76 = arith.constant 0 : index
    %69 = vector.load %arg8[%c19_75, %c0_76] : memref<36x128xf32, #tpu.memory_space<vmem>>, vector<16x128xf32>
    tpu.vector_store %arg8[%c19_75, %c0_76], %68 {strides = array<i32>} : memref<36x128xf32, #tpu.memory_space<vmem>>, vector<16x128xf32>,
    %c0_77 = arith.constant 0 : index
    %c0_78 = arith.constant 0 : index
    %70 = vector.load %arg8[%c0_77, %c0_78] : memref<36x128xf32, #tpu.memory_space<vmem>>, vector<34x128xf32>
    %c1_79 = arith.constant 1 : index
    %c0_80 = arith.constant 0 : index
    %c0_81 = arith.constant 0 : index
    %c0_82 = arith.constant 0 : index
    %71 = vector.load %arg3[%c1_79, %c0_80, %c0_81, %c0_82] : memref<2x3x128x128xf32, #tpu.memory_space<vmem>>, vector<1x1x128x128xf32>
    %72 = vector.shape_cast %71 : vector<1x1x128x128xf32> to vector<128x128xf32>
    %cst_83 = arith.constant dense<0.000000e+00> : vector<34x128xf32>
    %73 = tpu.matmul %70, %72, %cst_83 {dimension_numbers = #tpu.dot_dimension_numbers<[1], [0], [0], [1], [0, 0, 1, 1], [], []>} : vector<34x128xf32>, vector<128x128xf32>, vector<34x128xf32> -> vector<34x128xf32>
    %c1_84 = arith.constant 1 : index
    %c0_85 = arith.constant 0 : index
    %74 = vector.load %arg8[%c1_84, %c0_85] : memref<36x128xf32, #tpu.memory_space<vmem>>, vector<34x128xf32>
    %c1_86 = arith.constant 1 : index
    %c1_87 = arith.constant 1 : index
    %c0_88 = arith.constant 0 : index
    %c0_89 = arith.constant 0 : index
    %75 = vector.load %arg3[%c1_86, %c1_87, %c0_88, %c0_89] : memref<2x3x128x128xf32, #tpu.memory_space<vmem>>, vector<1x1x128x128xf32>
    %76 = vector.shape_cast %75 : vector<1x1x128x128xf32> to vector<128x128xf32>
    %cst_90 = arith.constant dense<0.000000e+00> : vector<34x128xf32>
    %77 = tpu.matmul %74, %76, %cst_90 {dimension_numbers = #tpu.dot_dimension_numbers<[1], [0], [0], [1], [0, 0, 1, 1], [], []>} : vector<34x128xf32>, vector<128x128xf32>, vector<34x128xf32> -> vector<34x128xf32>
    %78 = arith.addf %73, %77 : vector<34x128xf32>
    %c2_91 = arith.constant 2 : index
    %c0_92 = arith.constant 0 : index
    %79 = vector.load %arg8[%c2_91, %c0_92] : memref<36x128xf32, #tpu.memory_space<vmem>>, vector<34x128xf32>
    %c1_93 = arith.constant 1 : index
    %c2_94 = arith.constant 2 : index
    %c0_95 = arith.constant 0 : index
    %c0_96 = arith.constant 0 : index
    %80 = vector.load %arg3[%c1_93, %c2_94, %c0_95, %c0_96] : memref<2x3x128x128xf32, #tpu.memory_space<vmem>>, vector<1x1x128x128xf32>
    %81 = vector.shape_cast %80 : vector<1x1x128x128xf32> to vector<128x128xf32>
    %cst_97 = arith.constant dense<0.000000e+00> : vector<34x128xf32>
    %82 = tpu.matmul %79, %81, %cst_97 {dimension_numbers = #tpu.dot_dimension_numbers<[1], [0], [0], [1], [0, 0, 1, 1], [], []>} : vector<34x128xf32>, vector<128x128xf32>, vector<34x128xf32> -> vector<34x128xf32>
    %83 = arith.addf %78, %82 : vector<34x128xf32>
    %c2_98 = arith.constant 2 : index
    %c0_99 = arith.constant 0 : index
    %84 = vector.load %arg4[%c2_98, %c0_99] : memref<3x128xf32, #tpu.memory_space<vmem>>, vector<1x128xf32>
    %85 = vector.broadcast %84 : vector<1x128xf32> to vector<34x128xf32>
    %86 = arith.addf %83, %85 : vector<34x128xf32>
    %cst_100 = arith.constant 0.000000e+00 : f32
    %87 = vector.broadcast %cst_100 : f32 to vector<34x128xf32>
    %88 = arith.cmpf oge, %86, %87 : vector<34x128xf32>
    %c2_101 = arith.constant 2 : index
    %c0_102 = arith.constant 0 : index
    %89 = vector.load %arg5[%c2_101, %c0_102] : memref<3x128xf32, #tpu.memory_space<vmem>>, vector<1x128xf32>
    %90 = vector.broadcast %89 : vector<1x128xf32> to vector<34x128xf32>
    %91 = arith.mulf %90, %86 : vector<34x128xf32>
    %92 = arith.select %88, %86, %91 : vector<34x128xi1>, vector<34x128xf32>
    %93 = vector.extract_strided_slice %92 {offsets = [0, 0], sizes = [16, 128], strides = [1, 1]} : vector<34x128xf32> to vector<16x128xf32>
    %c0_103 = arith.constant 0 : index
    %c0_104 = arith.constant 0 : index
    %c0_105 = arith.constant 0 : index
    %94 = vector.load %arg6[%c0_103, %c0_104, %c0_105] : memref<2x16x128xf32, #tpu.memory_space<vmem>>, vector<1x16x128xf32>
    %95 = vector.shape_cast %94 : vector<1x16x128xf32> to vector<16x128xf32>
    %96 = vector.shape_cast %93 : vector<16x128xf32> to vector<1x16x128xf32>
    tpu.vector_store %arg6[%c0_103, %c0_104, %c0_105], %96 {strides = array<i32>} : memref<2x16x128xf32, #tpu.memory_space<vmem>>, vector<1x16x128xf32>,
    %97 = vector.extract_strided_slice %92 {offsets = [18, 0], sizes = [16, 128], strides = [1, 1]} : vector<34x128xf32> to vector<16x128xf32>
    %c1_106 = arith.constant 1 : index
    %c0_107 = arith.constant 0 : index
    %c0_108 = arith.constant 0 : index
    %98 = vector.load %arg6[%c1_106, %c0_107, %c0_108] : memref<2x16x128xf32, #tpu.memory_space<vmem>>, vector<1x16x128xf32>
    %99 = vector.shape_cast %98 : vector<1x16x128xf32> to vector<16x128xf32>
    %100 = vector.shape_cast %97 : vector<16x128xf32> to vector<1x16x128xf32>
    tpu.vector_store %arg6[%c1_106, %c0_107, %c0_108], %100 {strides = array<i32>} : memref<2x16x128xf32, #tpu.memory_space<vmem>>, vector<1x16x128xf32>,
    return
  }
  func.func @transform_0(%arg0: i32) -> (i32, i32, i32) {
    %c0_i32 = arith.constant 0 : i32
    %c0_i32_0 = arith.constant 0 : i32
    %c0_i32_1 = arith.constant 0 : i32
    return %arg0, %c0_i32, %c0_i32_0 : i32, i32, i32
  }
  func.func @transform_1(%arg0: i32) -> (i32, i32, i32) {
    %c0_i32 = arith.constant 0 : i32
    %c0_i32_0 = arith.constant 0 : i32
    %c0_i32_1 = arith.constant 0 : i32
    %c0_i32_2 = arith.constant 0 : i32
    return %c0_i32, %c0_i32_0, %c0_i32_1 : i32, i32, i32
  }
  func.func @transform_2(%arg0: i32) -> (i32, i32, i32, i32) {
    %c0_i32 = arith.constant 0 : i32
    %c0_i32_0 = arith.constant 0 : i32
    %c0_i32_1 = arith.constant 0 : i32
    %c0_i32_2 = arith.constant 0 : i32
    %c0_i32_3 = arith.constant 0 : i32
    return %c0_i32, %c0_i32_0, %c0_i32_1, %c0_i32_2 : i32, i32, i32, i32
  }
  func.func @transform_3(%arg0: i32) -> (i32, i32) {
    %c0_i32 = arith.constant 0 : i32
    %c0_i32_0 = arith.constant 0 : i32
    %c0_i32_1 = arith.constant 0 : i32
    return %c0_i32, %c0_i32_0 : i32, i32
  }
  func.func @transform_4(%arg0: i32) -> (i32, i32) {
    %c0_i32 = arith.constant 0 : i32
    %c0_i32_0 = arith.constant 0 : i32
    %c0_i32_1 = arith.constant 0 : i32
    return %c0_i32, %c0_i32_0 : i32, i32
  }
  func.func @transform_5(%arg0: i32) -> (i32, i32, i32) {
    %c0_i32 = arith.constant 0 : i32
    %c0_i32_0 = arith.constant 0 : i32
    %c0_i32_1 = arith.constant 0 : i32
    return %arg0, %c0_i32, %c0_i32_0 : i32, i32, i32
  }
}

</mosaic_0001>

<bundles_post_ra>
// kernel: tile.33
= control target key start
LH: loop header
LB: loop body
LE: loop exit
PB: predicated region body
PF: predicated region fallthrough
CT: control target
= control target key end

     0   :  { %s28_s0 = inlined_call_operand.vmem [shape: f32[8], index: 0, kind: input, shape index: {}]   ;;  %s29_s1 = inlined_call_operand.vmem [shape: f32[16,8], index: 1, kind: output, shape index: {}]  }
   0x1   :  { %v4_v0 = vld [vmem:[%s28_s0] ss:$0 sm:$0xff] }
   0x2   :  { %5 = vst [vmem:[%s29_s1] sm:$0xff] %v4_v0  ;;  %8 = vst [vmem:[%s29_s1 + $0x8] sm:$0xff] %v4_v0 }

// kernel: tile.42
= control target key start
LH: loop header
LB: loop body
LE: loop exit
PB: predicated region body
PF: predicated region fallthrough
CT: control target
= control target key end

     0   :  { %s131_s10 = smov 120   ;;  %s132_s11 = smov 104   ;;  %vm3_vm0 = vcmask 64512   ;;  %vm9_vm1 = vcmask 1048512   ;;  %vm15_vm2 = vcmask 982912   ;;  %vm21_vm3 = vcmask 917312   ;;  %s207_s0 = inlined_call_operand.vmem [shape: f32[16,8], index: 0, kind: input, shape index: {}]   ;;  %s208_s1 = inlined_call_operand.vmem [shape: f32[1,128], index: 1, kind: output, shape index: {}]  }
   0x1   :  { %v101_v0 = vld [vmem:[%s207_s0 + $0xf] sm:$0x1]   ;;  %v103_v1 = vld [vmem:[%s207_s0 + $0xd] sm:$0x1]   ;;  %v102_v2 = vld [vmem:[%s207_s0 + $0xe] sm:$0x1]  }
   0x2   :  { %7 = vrot.lane.b32.xlu0 %v101_v0, %s131_s10  ;;  %19 = vrot.lane.b32.xlu1 %v103_v1, %s132_s11  ;;  %v104_v3 = vld [vmem:[%s207_s0 + $0xc] sm:$0x1]   ;;  %s133_s16 = smov 112   ;;  %s134_s17 = smov 96   ;;  %v105_v4 = vld [vmem:[%s207_s0 + $0xb] sm:$0x1]  }
   0x3   :  { %v106_v5 = vld [vmem:[%s207_s0 + $0xa] sm:$0x1]   ;;  %v2_v6 = vld [vmem:[%s207_s0] sm:$0x1]   ;;  %s135_s24 = smov 88   ;;  %s136_s25 = smov 80  }
   0x4   :  { %4 = vst.msk [vmem:[#allocation0] sm:$0x1] %vm3_vm0, %v2_v6   ;;  %v107_v7 = vld [vmem:[%s207_s0 + $0x9] sm:$0x1]   ;;  %v108_v8 = vld [vmem:[%s207_s0 + $0x8] sm:$0x1]  }
   0x5   :  { %s137_s30 = smov 72   ;;  %s138_s2 = smov 64   ;;  %v109_v9 = vld [vmem:[%s207_s0 + $0x7] sm:$0x1]   ;;  %v110_v10 = vld [vmem:[%s207_s0 + $0x6] sm:$0x1]  }
   0x6   :  { %13 = vrot.lane.b32.xlu0 %v102_v2, %s133_s16  ;;  %25 = vrot.lane.b32.xlu1 %v104_v3, %s134_s17  ;;  %s139_s7 = smov 56   ;;  %s140_s8 = smov 48   ;;  %v111_v11 = vld [vmem:[%s207_s0 + $0x5] sm:$0x1]   ;;  %v112_v12 = vld [vmem:[%s207_s0 + $0x4] sm:$0x1]  }
   0x7   :  { %s141_s13 = smov 40   ;;  %s142_s14 = smov 32   ;;  %v113_v13 = vld [vmem:[%s207_s0 + $0x3] sm:$0x1]   ;;  %v114_v14 = vld [vmem:[%s207_s0 + $0x2] sm:$0x1]  }
   0x8   :  { %s143_s19 = smov 24   ;;  %s144_s20 = smov 16   ;;  %v115_v15 = vld [vmem:[%s207_s0 + $0x1] sm:$0x1]   ;;  %vm27_vm4 = vcmask 851712   ;;  %vm33_vm5 = vcmask 786112  }
   0x9   :  { %s145_s0 = smov 8   ;;  %vm39_vm6 = vcmask 720512   ;;  %vm45_vm7 = vcmask 654912   ;;  %vm51_vm8 = vcmask 589312   ;;  %vm57_vm9 = vcmask 523712  }
   0xa   :  { %31 = vrot.lane.b32.xlu0 %v105_v4, %s135_s24  ;;  %37 = vrot.lane.b32.xlu1 %v106_v5, %s136_s25  ;;  %vm63_vm10 = vcmask 458112   ;;  %vm69_vm11 = vcmask 392512   ;;  %vm75_vm12 = vcmask 326912   ;;  %vm81_vm13 = vcmask 261312  }
   0xb   :  { %vm87_vm14 = vcmask 195712   ;;  %vm93_vm15 = vcmask 130112  }
   0xe   :  { %43 = vrot.lane.b32.xlu0 %v107_v7, %s137_s30  ;;  %49 = vrot.lane.b32.xlu1 %v108_v8, %s138_s2 }
  0x12   :  { %55 = vrot.lane.b32.xlu0 %v109_v9, %s139_s7  ;;  %61 = vrot.lane.b32.xlu1 %v110_v10, %s140_s8 }
  0x16   :  { %67 = vrot.lane.b32.xlu0 %v111_v11, %s141_s13  ;;  %73 = vrot.lane.b32.xlu1 %v112_v12, %s142_s14 }
  0x1a   :  { %79 = vrot.lane.b32.xlu0 %v113_v13, %s143_s19  ;;  %85 = vrot.lane.b32.xlu1 %v114_v14, %s144_s20 }
  0x1e   :  { %91 = vrot.lane.b32.xlu0 %v115_v15, %s145_s0 }
  0x74   :  { %v8_v16 = vpop.permute.xlu0 %7   ;;  %v20_v17 = vpop.permute.xlu1 %19  }
  0x75   :  { %10 = vst.msk [vmem:[#allocation0] sm:$0x1] %vm9_vm1, %v8_v16  }
  0x78   :  { %v14_v18 = vpop.permute.xlu0 %13   ;;  %v26_v19 = vpop.permute.xlu1 %25  }
  0x79   :  { %16 = vst.msk [vmem:[#allocation0] sm:$0x1] %vm15_vm2, %v14_v18  }
  0x7a   :  { %22 = vst.msk [vmem:[#allocation0] sm:$0x1] %vm21_vm3, %v20_v17  }
  0x7b   :  { %28 = vst.msk [vmem:[#allocation0] sm:$0x1] %vm27_vm4, %v26_v19  }
  0x7c   :  { %v32_v20 = vpop.permute.xlu0 %31   ;;  %v38_v21 = vpop.permute.xlu1 %37  }
  0x7d   :  { %34 = vst.msk [vmem:[#allocation0] sm:$0x1] %vm33_vm5, %v32_v20  }
  0x7e   :  { %40 = vst.msk [vmem:[#allocation0] sm:$0x1] %vm39_vm6, %v38_v21  }
  0x80   :  { %v44_v22 = vpop.permute.xlu0 %43   ;;  %v50_v23 = vpop.permute.xlu1 %49  }
  0x81   :  { %46 = vst.msk [vmem:[#allocation0] sm:$0x1] %vm45_vm7, %v44_v22  }
  0x82   :  { %52 = vst.msk [vmem:[#allocation0] sm:$0x1] %vm51_vm8, %v50_v23  }
  0x84   :  { %v56_v24 = vpop.permute.xlu0 %55   ;;  %v62_v25 = vpop.permute.xlu1 %61  }
  0x85   :  { %58 = vst.msk [vmem:[#allocation0] sm:$0x1] %vm57_vm9, %v56_v24  }
  0x86   :  { %64 = vst.msk [vmem:[#allocation0] sm:$0x1] %vm63_vm10, %v62_v25  }
  0x88   :  { %v68_v26 = vpop.permute.xlu0 %67   ;;  %v74_v27 = vpop.permute.xlu1 %73  }
  0x89   :  { %70 = vst.msk [vmem:[#allocation0] sm:$0x1] %vm69_vm11, %v68_v26  }
  0x8a   :  { %76 = vst.msk [vmem:[#allocation0] sm:$0x1] %vm75_vm12, %v74_v27  }
  0x8c   :  { %v80_v28 = vpop.permute.xlu0 %79   ;;  %v86_v29 = vpop.permute.xlu1 %85  }
  0x8d   :  { %82 = vst.msk [vmem:[#allocation0] sm:$0x1] %vm81_vm13, %v80_v28  }
  0x8e   :  { %88 = vst.msk [vmem:[#allocation0] sm:$0x1] %vm87_vm14, %v86_v29  }
  0x90   :  { %v92_v30 = vpop.permute.xlu0 %91  }
  0x91   :  { %94 = vst.msk [vmem:[#allocation0] sm:$0x1] %vm93_vm15, %v92_v30  }
  0x98   :  { %v98_v31 = vld [vmem:[#allocation0] sm:$0x1] }
  0x99   :  { %100 = vst [vmem:[%s208_s1] sm:$0x1] %v98_v31 }

// kernel: triple_conv_pr.1
= control target key start
LH: loop header
LB: loop body
LE: loop exit
PB: predicated region body
PF: predicated region fallthrough
CT: control target
= control target key end

     0   :  { %v2044_v0 = vmov 0.0|0.0   ;;  %v2045_v4 = vmov 0.0   ;;  %vm31_vm0 = vcmask 523264   ;;  %vm20_vm1 = vcmask 516096   ;;  %s2687_s1 = inlined_call_operand.vmem [shape: f32[3,64,128], index: 1, kind: input, shape index: {}]   ;;  %s2688_s0 = inlined_call_operand.vmem [shape: f32[2,16,64], index: 0, kind: input, shape index: {}]   ;;  %s2689_s2 = inlined_call_operand.vmem [shape: f32[2,3,128,128], index: 2, kind: input, shape index: {}]   ;;  %s2690_s3 = inlined_call_operand.vmem [shape: f32[3,128], index: 3, kind: input, shape index: {}]   ;;  %s2691_s4 = inlined_call_operand.vmem [shape: f32[3,128], index: 4, kind: input, shape index: {}]   ;;  %s2692_s5 = inlined_call_operand.vmem [shape: f32[2,16,128], index: 5, kind: output, shape index: {}]  }
   0x1   :  { %2033 = vmatprep.subr.bf16.mxu1 %v2044_v0  ;;  %1853 = vmatprep.subr.bf16.mxu0 %v2044_v0  ;;  %v1193_v1 = vld [vmem:[%s2687_s1 + $0x40] sm:$0xff]  ;;  %v1194_v2 = vld [vmem:[%s2687_s1 + $0x48] sm:$0xff]  ;;  %v1195_v3 = vld [vmem:[%s2687_s1 + $0x50] sm:$0xff]  ;;  %23 = vst [vmem:[#allocation3] sm:$0x1] %v2045_v4  ;;  %vm2046_vm2 = vmmov 0  }
   0x2   :  { %24 = vst [vmem:[#allocation3 + $0x11] sm:$0x1] %v2045_v4  ;;  %27 = vst [vmem:[#allocation3 + $0x12] sm:$0x1] %v2045_v4  ;;  %v1854_v5 = vpack.c.bf16 %v1194_v2, %v1193_v1  ;;  %v1196_v6 = vld [vmem:[%s2687_s1 + $0x58] sm:$0xff]  ;;  %1506 = vmatprep.mubr.msk.f32.mxu1 %vm2046_vm2, %v2045_v4  ;;  %1494 = vmatprep.mubr.msk.f32.mxu0 %vm2046_vm2, %v2045_v4  ;;  %v29_v9 = vld [vmem:[%s2688_s0] sm:$0xff] }
   0x3   :  { %28 = vst [vmem:[#allocation3 + $0x23] sm:$0x1] %v2045_v4  ;;  %22 = vst.msk [vmem:[#allocation2 + $0x11] sm:$0x1] %vm20_vm1, %v2045_v4  ;;  %v1192_v7 = vld [vmem:[%s2688_s0 + $0x18] sm:$0xff]  ;;  %v1857_v8 = vpack.c.bf16 %v1196_v6, %v1195_v3  ;;  %v1197_v10 = vld [vmem:[%s2687_s1 + $0x60] sm:$0xff] }
   0x4   :  { %25 = vst.msk [vmem:[#allocation2 + $0x12] sm:$0x1] %vm20_vm1, %v2045_v4  ;;  %21 = vst.msk [vmem:[#allocation2] sm:$0x1] %vm20_vm1, %v2045_v4  ;;  %2037 = vmatpush3.bf16.msra.mxu1 %v1854_v5  ;;  %1855 = vmatpush3.bf16.msra.mxu0 %v1854_v5  ;;  %v1198_v11 = vld [vmem:[%s2687_s1 + $0x68] sm:$0xff]  ;;  %v1191_v13 = vld [vmem:[%s2688_s0 + $0x10] sm:$0xff] }
   0x5   :  { %26 = vst.msk [vmem:[#allocation2 + $0x23] sm:$0x1] %vm20_vm1, %v2045_v4  ;;  %2034 = vmatprep.subr.bf16.mxu1 %v2044_v0  ;;  %1856 = vmatprep.subr.bf16.mxu0 %v2044_v0  ;;  %v30_v12 = vld [vmem:[%s2688_s0 + $0x8] sm:$0xff]  ;;  %v1860_v14 = vpack.c.bf16 %v1198_v11, %v1197_v10  ;;  %v1199_v15 = vld [vmem:[%s2687_s1 + $0x70] sm:$0xff]  ;;  %v1200_v16 = vld [vmem:[%s2687_s1 + $0x78] sm:$0xff] }
   0x6   :  { %38 = vst.msk [vmem:[#allocation2 + $0x1b] sm:$0xff] %vm31_vm0, %v1192_v7  ;;  %32 = vst.msk [vmem:[#allocation2 + $0x1] sm:$0xff] %vm31_vm0, %v29_v9  ;;  %v1863_v17 = vpack.c.bf16 %v1200_v16, %v1199_v15  ;;  %v44_v18 = vld [vmem:[%s2687_s1] sm:$0xff]  ;;  %v45_v19 = vld [vmem:[%s2687_s1 + $0x8] sm:$0xff] }
   0x7   :  { %33 = vst.msk [vmem:[#allocation2 + $0x9] sm:$0xff] %vm31_vm0, %v30_v12  ;;  %37 = vst.msk [vmem:[#allocation2 + $0x13] sm:$0xff] %vm31_vm0, %v1191_v13  ;;  %v1211_v20 = vld [vmem:[%s2687_s1 + $0x80] sm:$0xff]  ;;  %v1212_v21 = vld [vmem:[%s2687_s1 + $0x88] sm:$0xff]  ;;  %v1866_v24 = vpack.c.bf16 %v45_v19, %v44_v18 }
   0x8   :  { %2038 = vmatpush3.bf16.msra.mxu1 %v1857_v8  ;;  %1858 = vmatpush3.bf16.msra.mxu0 %v1857_v8  ;;  %v1878_v25 = vpack.c.bf16 %v1212_v21, %v1211_v20  ;;  %v46_v26 = vld [vmem:[%s2687_s1 + $0x10] sm:$0xff]  ;;  %v47_v27 = vld [vmem:[%s2687_s1 + $0x18] sm:$0xff]  ;;  %v48_v33 = vld [vmem:[%s2687_s1 + $0x20] sm:$0xff] }
   0x9   :  { %2035 = vmatprep.subr.bf16.mxu1 %v2044_v0  ;;  %1859 = vmatprep.subr.bf16.mxu0 %v2044_v0  ;;  %v1213_v28 = vld [vmem:[%s2687_s1 + $0x90] sm:$0xff]  ;;  %v1214_v29 = vld [vmem:[%s2687_s1 + $0x98] sm:$0xff]  ;;  %v1869_v31 = vpack.c.bf16 %v47_v27, %v46_v26  ;;  %v49_v34 = vld [vmem:[%s2687_s1 + $0x28] sm:$0xff] }
   0xa   :  { %v1881_v32 = vpack.c.bf16 %v1214_v29, %v1213_v28  ;;  %v1215_v35 = vld [vmem:[%s2687_s1 + $0xa0] sm:$0xff]  ;;  %v1216_v36 = vld [vmem:[%s2687_s1 + $0xa8] sm:$0xff]  ;;  %v1872_v38 = vpack.c.bf16 %v49_v34, %v48_v33  ;;  %v50_v40 = vld [vmem:[%s2687_s1 + $0x30] sm:$0xff] }
   0xb   :  { %v1884_v39 = vpack.c.bf16 %v1216_v36, %v1215_v35  ;;  %v51_v41 = vld [vmem:[%s2687_s1 + $0x38] sm:$0xff]  ;;  %v1217_v42 = vld [vmem:[%s2687_s1 + $0xb0] sm:$0xff]  ;;  %v1226_v57 = vld [vmem:[%s2689_s2 + $0x80] sm:$0xff] }
   0xc   :  { %2039 = vmatpush3.bf16.msra.mxu1 %v1860_v14  ;;  %1861 = vmatpush3.bf16.msra.mxu0 %v1860_v14  ;;  %v1218_v43 = vld [vmem:[%s2687_s1 + $0xb8] sm:$0xff]  ;;  %v1875_v45 = vpack.c.bf16 %v51_v41, %v50_v40  ;;  %v1227_v58 = vld [vmem:[%s2689_s2 + $0x88] sm:$0xff]  ;;  %v1228_v60 = vld [vmem:[%s2689_s2 + $0x90] sm:$0xff] }
   0xd   :  { %2036 = vmatprep.subr.bf16.mxu1 %v2044_v0  ;;  %1862 = vmatprep.subr.bf16.mxu0 %v2044_v0  ;;  %v56_v22 = vld [vmem:[#allocation2 + $0x21] sm:$0x3]  ;;  %v1887_v46 = vpack.c.bf16 %v1218_v43, %v1217_v42  ;;  %v1890_v59 = vpack.c.bf16 %v1227_v58, %v1226_v57  ;;  %v1229_v61 = vld [vmem:[%s2689_s2 + $0x98] sm:$0xff]  ;;  %v1231_v1 = vld [vmem:[%s2689_s2 + $0xa8] sm:$0xff] }
   0xe   :  { %v52_v23 = vld [vmem:[#allocation2 + $0x1] sm:$0xff]  ;;  %v53_v30 = vld [vmem:[#allocation2 + $0x9] sm:$0xff]  ;;  %v54_v37 = vld [vmem:[#allocation2 + $0x11] sm:$0xff]  ;;  %v1893_v62 = vpack.c.bf16 %v1229_v61, %v1228_v60 }
   0xf   :  { %v55_v44 = vld [vmem:[#allocation2 + $0x19] sm:$0xff]  ;;  %v276_v48 = vld [vmem:[#allocation2 + $0x2] sm:$0xff]  ;;  %v277_v50 = vld [vmem:[#allocation2 + $0xa] sm:$0xff] }
  0x10   :  { %2040 = vmatpush3.bf16.msra.mxu1 %v1863_v17  ;;  %1864 = vmatpush3.bf16.msra.mxu0 %v1863_v17  ;;  %v39_v47 = vld [vmem:[#allocation2] sm:$0xff]  ;;  %v40_v49 = vld [vmem:[#allocation2 + $0x8] sm:$0xff]  ;;  %v41_v51 = vld [vmem:[#allocation2 + $0x10] sm:$0xff] }
  0x11   :  { %1865 = vmatprep.subr.bf16.mxu1 %v2044_v0  ;;  %1877 = vmatprep.subr.bf16.mxu0 %v2044_v0  ;;  %v278_v52 = vld [vmem:[#allocation2 + $0x12] sm:$0xff]  ;;  %v279_v54 = vld [vmem:[#allocation2 + $0x1a] sm:$0xff]  ;;  %v280_v56 = vld [vmem:[#allocation2 + $0x22] sm:$0x3] }
  0x12   :  { %v42_v53 = vld [vmem:[#allocation2 + $0x18] sm:$0xff]  ;;  %v43_v55 = vld [vmem:[#allocation2 + $0x20] sm:$0x3]  ;;  %v441_v3 = vld [vmem:[%s2689_s2 + $0x8] sm:$0xff] }
  0x13   :  { %1507 = vmatmul.mubr.msk.f32.vlgmr.msra.gmra.mrb[0].mxu1 %vm31_vm0, %v56_v22  ;;  %1495 = vmatmul.mubr.msk.f32.vlgmr.msra.gmra.mrb[0].mxu0 %vm31_vm0, %v52_v23  ;;  %v1230_v63 = vld [vmem:[%s2689_s2 + $0xa0] sm:$0xff]  ;;  %v1232_v7 = vld [vmem:[%s2689_s2 + $0xb0] sm:$0xff]  ;;  %v1233_v8 = vld [vmem:[%s2689_s2 + $0xb8] sm:$0xff] }
  0x14   :  { %1867 = vmatpush3.bf16.msra.mxu1 %v1866_v24  ;;  %1879 = vmatpush3.bf16.msra.mxu0 %v1878_v25  ;;  %v440_v2 = vld [vmem:[%s2689_s2] sm:$0xff]  ;;  %v1896_v5 = vpack.c.bf16 %v1231_v1, %v1230_v63  ;;  %v442_v9 = vld [vmem:[%s2689_s2 + $0x10] sm:$0xff]  ;;  %v443_v10 = vld [vmem:[%s2689_s2 + $0x18] sm:$0xff]  ;;  %v1899_v11 = vpack.c.bf16 %v1233_v8, %v1232_v7 }
  0x15   :  { %1497 = vmatprep.mubr.msk.f32.mxu0 %vm2046_vm2, %v2045_v4  ;;  %1868 = vmatprep.subr.bf16.mxu1 %v2044_v0  ;;  %v1914_v6 = vpack.c.bf16 %v441_v3, %v440_v2  ;;  %v1917_v12 = vpack.c.bf16 %v443_v10, %v442_v9  ;;  %v1234_v13 = vld [vmem:[%s2689_s2 + $0xc0] sm:$0xff]  ;;  %v1235_v14 = vld [vmem:[%s2689_s2 + $0xc8] sm:$0xff]  ;;  %v1236_v19 = vld [vmem:[%s2689_s2 + $0xd0] sm:$0xff] }
  0x16   :  { %1880 = vmatprep.subr.bf16.mxu0 %v2044_v0  ;;  %1525 = vmatprep.mubr.msk.f32.mxu1 %vm2046_vm2, %v2045_v4  ;;  %v444_v15 = vld [vmem:[%s2689_s2 + $0x20] sm:$0xff]  ;;  %v445_v16 = vld [vmem:[%s2689_s2 + $0x28] sm:$0xff]  ;;  %v1902_v17 = vpack.c.bf16 %v1235_v14, %v1234_v13  ;;  %v1237_v20 = vld [vmem:[%s2689_s2 + $0xd8] sm:$0xff] }
  0x17   :  { %1498 = vmatmul.mubr.msk.f32.gmra.mrb[2].mxu0 %vm31_vm0, %v53_v30  ;;  %v1920_v18 = vpack.c.bf16 %v445_v16, %v444_v15  ;;  %v446_v21 = vld [vmem:[%s2689_s2 + $0x30] sm:$0xff]  ;;  %v447_v22 = vld [vmem:[%s2689_s2 + $0x38] sm:$0xff]  ;;  %v1905_v23 = vpack.c.bf16 %v1237_v20, %v1236_v19  ;;  %v1238_v25 = vld [vmem:[%s2689_s2 + $0xe0] sm:$0xff] }
  0x18   :  { %1870 = vmatpush3.bf16.msra.mxu1 %v1869_v31  ;;  %1882 = vmatpush3.bf16.msra.mxu0 %v1881_v32  ;;  %v1923_v24 = vpack.c.bf16 %v447_v22, %v446_v21  ;;  %v1239_v26 = vld [vmem:[%s2689_s2 + $0xe8] sm:$0xff]  ;;  %v448_v27 = vld [vmem:[%s2689_s2 + $0x40] sm:$0xff]  ;;  %v1240_v31 = vld [vmem:[%s2689_s2 + $0xf0] sm:$0xff] }
  0x19   :  { %1500 = vmatprep.mubr.msk.f32.mxu0 %vm2046_vm2, %v2045_v4  ;;  %1871 = vmatprep.subr.bf16.mxu1 %v2044_v0  ;;  %v449_v28 = vld [vmem:[%s2689_s2 + $0x48] sm:$0xff]  ;;  %v1908_v29 = vpack.c.bf16 %v1239_v26, %v1238_v25  ;;  %v1241_v32 = vld [vmem:[%s2689_s2 + $0xf8] sm:$0xff]  ;;  %v450_v33 = vld [vmem:[%s2689_s2 + $0x50] sm:$0xff] }
  0x1a   :  { %1883 = vmatprep.subr.bf16.mxu0 %v2044_v0  ;;  %v1926_v30 = vpack.c.bf16 %v449_v28, %v448_v27  ;;  %v451_v34 = vld [vmem:[%s2689_s2 + $0x58] sm:$0xff]  ;;  %v1911_v35 = vpack.c.bf16 %v1241_v32, %v1240_v31  ;;  %v454_v40 = vld [vmem:[%s2689_s2 + $0x70] sm:$0xff]  ;;  %v2357_v58 = vld [vmem:[%s2690_s3] ss:$0 sm:$0xff] }
  0x1b   :  { %1501 = vmatmul.mubr.msk.f32.gmra.mrb[4].mxu0 %vm31_vm0, %v54_v37  ;;  %v1929_v36 = vpack.c.bf16 %v451_v34, %v450_v33  ;;  %v452_v37 = vld [vmem:[%s2689_s2 + $0x60] sm:$0xff]  ;;  %v455_v41 = vld [vmem:[%s2689_s2 + $0x78] sm:$0xff]  ;;  %v1243_v1 = vld [vmem:[%s2689_s2 + $0x108] sm:$0xff] }
  0x1c   :  { %1873 = vmatpush3.bf16.msra.mxu1 %v1872_v38  ;;  %1885 = vmatpush3.bf16.msra.mxu0 %v1884_v39  ;;  %v453_v38 = vld [vmem:[%s2689_s2 + $0x68] sm:$0xff]  ;;  %v1935_v42 = vpack.c.bf16 %v455_v41, %v454_v40  ;;  %v2362_v60 = vld [vmem:[%s2691_s4] ss:$0 sm:$0xff]  ;;  %v1245_v13 = vld [vmem:[%s2689_s2 + $0x118] sm:$0xff] }
  0x1d   :  { %1503 = vmatprep.mubr.msk.f32.mxu0 %vm2046_vm2, %v2045_v4  ;;  %1874 = vmatprep.subr.bf16.mxu1 %v2044_v0  ;;  %v1932_v39 = vpack.c.bf16 %v453_v38, %v452_v37  ;;  %v1242_v63 = vld [vmem:[%s2689_s2 + $0x100] sm:$0xff]  ;;  %v1247_v25 = vld [vmem:[%s2689_s2 + $0x128] sm:$0xff]  ;;  %v1249_v37 = vld [vmem:[%s2689_s2 + $0x138] sm:$0xff] }
  0x1e   :  { %1886 = vmatprep.subr.bf16.mxu0 %v2044_v0  ;;  %v1938_v9 = vpack.c.bf16 %v1243_v1, %v1242_v63  ;;  %v1256_v1 = vld [vmem:[%s2689_s2 + $0x170] sm:$0xff] }
  0x1f   :  { %1504 = vmatmul.mubr.msk.f32.gmra.mrb[6].mxu0 %vm31_vm0, %v55_v44 }
  0x20   :  { %1876 = vmatpush3.bf16.msra.mxu1 %v1875_v45  ;;  %1888 = vmatpush3.bf16.msra.mxu0 %v1887_v46 }
  0x21   :  { %1556 = vmatprep.mubr.msk.f32.mxu0 %vm2046_vm2, %v2045_v4  ;;  %1889 = vmatprep.subr.bf16.mxu1 %v2044_v0 }
  0x22   :  { %1913 = vmatprep.subr.bf16.mxu0 %v2044_v0 }
  0x23   :  { %1526 = vmatmul.mubr.msk.f32.vlgmr.msra.gmra.mrb[2].mxu1 %vm31_vm0, %v39_v47  ;;  %1557 = vmatmul.mubr.msk.f32.vlgmr.msra.gmra.mrb[8].mxu0 %vm31_vm0, %v276_v48 }
  0x24   :  { %1528 = vmatprep.mubr.msk.f32.mxu1 %vm2046_vm2, %v2045_v4  ;;  %1559 = vmatprep.mubr.msk.f32.mxu0 %vm2046_vm2, %v2045_v4 }
  0x25   :  { %1891 = vmatpush3.bf16.msra.mxu1 %v1890_v59  ;;  %1915 = vmatpush3.bf16.msra.mxu0 %v1914_v6 }
  0x26   :  { %1892 = vmatprep.subr.bf16.mxu1 %v2044_v0  ;;  %1916 = vmatprep.subr.bf16.mxu0 %v2044_v0 }
  0x27   :  { %1529 = vmatmul.mubr.msk.f32.gmra.mrb[4].mxu1 %vm31_vm0, %v40_v49  ;;  %1560 = vmatmul.mubr.msk.f32.gmra.mrb[10].mxu0 %vm31_vm0, %v277_v50 }
  0x28   :  { %1531 = vmatprep.mubr.msk.f32.mxu1 %vm2046_vm2, %v2045_v4  ;;  %1562 = vmatprep.mubr.msk.f32.mxu0 %vm2046_vm2, %v2045_v4 }
  0x29   :  { %1894 = vmatpush3.bf16.msra.mxu1 %v1893_v62  ;;  %1918 = vmatpush3.bf16.msra.mxu0 %v1917_v12  ;;  %v1244_v12 = vld [vmem:[%s2689_s2 + $0x110] sm:$0xff] }
  0x2a   :  { %1895 = vmatprep.subr.bf16.mxu1 %v2044_v0  ;;  %1919 = vmatprep.subr.bf16.mxu0 %v2044_v0  ;;  %v1941_v21 = vpack.c.bf16 %v1245_v13, %v1244_v12  ;;  %v1276_v12 = vld [vmem:[%s2689_s2 + $0x200] sm:$0xff]  ;;  %v1277_v13 = vld [vmem:[%s2689_s2 + $0x208] sm:$0xff] }
  0x2b   :  { %1532 = vmatmul.mubr.msk.f32.gmra.mrb[6].mxu1 %vm31_vm0, %v41_v51  ;;  %1563 = vmatmul.mubr.msk.f32.gmra.mrb[12].mxu0 %vm31_vm0, %v278_v52 }
  0x2c   :  { %1534 = vmatprep.mubr.msk.f32.mxu1 %vm2046_vm2, %v2045_v4  ;;  %1565 = vmatprep.mubr.msk.f32.mxu0 %vm2046_vm2, %v2045_v4 }
  0x2d   :  { %1897 = vmatpush3.bf16.msra.mxu1 %v1896_v5  ;;  %1921 = vmatpush3.bf16.msra.mxu0 %v1920_v18 }
  0x2e   :  { %1898 = vmatprep.subr.bf16.mxu1 %v2044_v0  ;;  %1922 = vmatprep.subr.bf16.mxu0 %v2044_v0 }
  0x2f   :  { %1535 = vmatmul.mubr.msk.f32.gmra.mrb[8].mxu1 %vm31_vm0, %v42_v53  ;;  %1566 = vmatmul.mubr.msk.f32.gmra.mrb[14].mxu0 %vm31_vm0, %v279_v54 }
  0x30   :  { %1537 = vmatprep.mubr.msk.f32.mxu1 %vm2046_vm2, %v2045_v4  ;;  %1568 = vmatprep.mubr.msk.f32.mxu0 %vm2046_vm2, %v2045_v4 }
  0x31   :  { %1900 = vmatpush3.bf16.msra.mxu1 %v1899_v11  ;;  %1924 = vmatpush3.bf16.msra.mxu0 %v1923_v24  ;;  %v1246_v24 = vld [vmem:[%s2689_s2 + $0x120] sm:$0xff] }
  0x32   :  { %1901 = vmatprep.subr.bf16.mxu1 %v2044_v0  ;;  %1925 = vmatprep.subr.bf16.mxu0 %v2044_v0  ;;  %v1944_v33 = vpack.c.bf16 %v1247_v25, %v1246_v24  ;;  %v1282_v24 = vld [vmem:[%s2689_s2 + $0x230] sm:$0xff]  ;;  %v1283_v25 = vld [vmem:[%s2689_s2 + $0x238] sm:$0xff] }
  0x33   :  { %1538 = vmatmul.mubr.msk.f32.gmra.mrb[10].mxu1 %vm31_vm0, %v43_v55  ;;  %1569 = vmatmul.mubr.msk.f32.gmra.mrb[16].mxu0 %vm31_vm0, %v280_v56 }
  0x34   :  { %1603 = vmatprep.mubr.msk.f32.mxu1 %vm2046_vm2, %v2045_v4  ;;  %1650 = vmatprep.mubr.msk.f32.mxu0 %vm2046_vm2, %v2045_v4 }
  0x35   :  { %1903 = vmatpush3.bf16.msra.mxu1 %v1902_v17  ;;  %1927 = vmatpush3.bf16.msra.mxu0 %v1926_v30 }
  0x36   :  { %1904 = vmatprep.subr.bf16.mxu1 %v2044_v0  ;;  %1928 = vmatprep.subr.bf16.mxu0 %v2044_v0 }
  0x39   :  { %1906 = vmatpush3.bf16.msra.mxu1 %v1905_v23  ;;  %1930 = vmatpush3.bf16.msra.mxu0 %v1929_v36  ;;  %v1248_v36 = vld [vmem:[%s2689_s2 + $0x130] sm:$0xff] }
  0x3a   :  { %1907 = vmatprep.subr.bf16.mxu1 %v2044_v0  ;;  %1931 = vmatprep.subr.bf16.mxu0 %v2044_v0 }
  0x3d   :  { %1909 = vmatpush3.bf16.msra.mxu1 %v1908_v29  ;;  %1933 = vmatpush3.bf16.msra.mxu0 %v1932_v39 }
  0x3e   :  { %1910 = vmatprep.subr.bf16.mxu1 %v2044_v0  ;;  %1934 = vmatprep.subr.bf16.mxu0 %v2044_v0 }
  0x41   :  { %1912 = vmatpush3.bf16.msra.mxu1 %v1911_v35  ;;  %1936 = vmatpush3.bf16.msra.mxu0 %v1935_v42 }
  0x42   :  { %1937 = vmatprep.subr.bf16.mxu1 %v2044_v0  ;;  %1961 = vmatprep.subr.bf16.mxu0 %v2044_v0 }
  0xe6   :  { %v2352_v43 = vpop.f32.mrb[0].mxu1  ;;  %v147_v44 = vpop.f32.mrb[0].mxu0 }
  0xe7   :  { %v1508_v45 = vpop.f32.mrb[1].mxu1  ;;  %v1496_v46 = vpop.f32.mrb[1].mxu0 }
  0xea   :  { %v152_v47 = vpop.f32.mrb[2].mxu0 }
  0xeb   :  { %v1499_v48 = vpop.f32.mrb[3].mxu0 }
  0xee   :  { %v157_v49 = vpop.f32.mrb[4].mxu0 }
  0xef   :  { %v1502_v50 = vpop.f32.mrb[5].mxu0 }
  0xf0   :  { %v1250_v50 = vld [vmem:[%s2689_s2 + $0x140] sm:$0xff] }
  0xf2   :  { %v162_v51 = vpop.f32.mrb[6].mxu0 }
  0xf3   :  { %v1505_v52 = vpop.f32.mrb[7].mxu0 }
  0xf6   :  { %v252_v53 = vpop.f32.mrb[2].mxu1  ;;  %v371_v54 = vpop.f32.mrb[8].mxu0 }
  0xf7   :  { %v253_v55 = vadd.f32 %v252_v53, %v147_v44  ;;  %v1527_v56 = vpop.f32.mrb[3].mxu1  ;;  %v1558_v57 = vpop.f32.mrb[9].mxu0 }
  0xf9   :  { %v395_v59 = vadd.f32 %v371_v54, %v253_v55  ;;  %v1252_v54 = vld [vmem:[%s2689_s2 + $0x150] sm:$0xff] }
  0xfa   :  { %v257_v61 = vpop.f32.mrb[4].mxu1  ;;  %v376_v62 = vpop.f32.mrb[10].mxu0 }
  0xfb   :  { %v405_v2 = vadd.f32 %v2357_v58, %v395_v59  ;;  %v258_v3 = vadd.f32 %v257_v61, %v152_v47  ;;  %v1530_v5 = vpop.f32.mrb[5].mxu1  ;;  %v1561_v6 = vpop.f32.mrb[11].mxu0  ;;  %v1947_v47 = vpack.c.bf16 %v1249_v37, %v1248_v36  ;;  %v1254_v61 = vld [vmem:[%s2689_s2 + $0x160] sm:$0xff]  ;;  %v1266_v36 = vld [vmem:[%s2689_s2 + $0x1b0] sm:$0xff]  ;;  %v1267_v37 = vld [vmem:[%s2689_s2 + $0x1b8] sm:$0xff] }
  0xfc   :  { %v1257_v5 = vld [vmem:[%s2689_s2 + $0x178] sm:$0xff] }
  0xfd   :  { %vm410_vm3 = vcmp.ge.f32.partialorder %v405_v2, 0.0  ;;  %v420_v7 = vmul.f32 %v2362_v60, %v405_v2  ;;  %v396_v8 = vadd.f32 %v376_v62, %v258_v3  ;;  %v1255_v62 = vld [vmem:[%s2689_s2 + $0x168] sm:$0xff]  ;;  %v1959_v6 = vpack.c.bf16 %v1257_v5, %v1256_v1 }
  0xfe   :  { %v262_v10 = vpop.f32.mrb[6].mxu1  ;;  %v381_v11 = vpop.f32.mrb[12].mxu0  ;;  %v1956_v63 = vpack.c.bf16 %v1255_v62, %v1254_v61 }
  0xff   :  { %v425_v14 = vsel %vm410_vm3, %v405_v2, %v420_v7  ;;  %v406_v15 = vadd.f32 %v2357_v58, %v396_v8  ;;  %v263_v16 = vadd.f32 %v262_v10, %v157_v49  ;;  %v1533_v17 = vpop.f32.mrb[7].mxu1  ;;  %v1564_v18 = vpop.f32.mrb[13].mxu0 }
 0x100   :  { %430 = vst [vmem:[#allocation3 + $0x1] sm:$0xff] %v425_v14  ;;  %1604 = vmatmul.mubr.f32.vlgmr.msra.gmra.mrb[12].mxu1 %v425_v14  ;;  %v1962_v14 = vpack.c.bf16 %v1277_v13, %v1276_v12  ;;  %v1280_v18 = vld [vmem:[%s2689_s2 + $0x220] sm:$0xff] }
 0x101   :  { %vm411_vm4 = vcmp.ge.f32.partialorder %v406_v15, 0.0  ;;  %v421_v19 = vmul.f32 %v2362_v60, %v406_v15  ;;  %v397_v20 = vadd.f32 %v381_v11, %v263_v16  ;;  %1939 = vmatpush3.bf16.msra.mxu1 %v1938_v9  ;;  %1606 = vmatprep.mubr.msk.f32.mxu1 %vm2046_vm2, %v2045_v4  ;;  %v1279_v16 = vld [vmem:[%s2689_s2 + $0x218] sm:$0xff] }
 0x102   :  { %v267_v22 = vpop.f32.mrb[8].mxu1  ;;  %v386_v23 = vpop.f32.mrb[14].mxu0  ;;  %1940 = vmatprep.subr.bf16.mxu1 %v2044_v0 }
 0x103   :  { %v426_v26 = vsel %vm411_vm4, %v406_v15, %v421_v19  ;;  %v407_v27 = vadd.f32 %v2357_v58, %v397_v20  ;;  %v268_v28 = vadd.f32 %v267_v22, %v162_v51  ;;  %v1536_v29 = vpop.f32.mrb[9].mxu1  ;;  %v1567_v30 = vpop.f32.mrb[15].mxu0  ;;  %v1251_v51 = vld [vmem:[%s2689_s2 + $0x148] sm:$0xff]  ;;  %v1278_v15 = vld [vmem:[%s2689_s2 + $0x210] sm:$0xff]  ;;  %v1260_v20 = vld [vmem:[%s2689_s2 + $0x180] sm:$0xff] }
 0x104   :  { %431 = vst [vmem:[#allocation3 + $0x9] sm:$0xff] %v426_v26  ;;  %1607 = vmatmul.mubr.f32.gmra.mrb[14].mxu1 %v426_v26  ;;  %v1950_v53 = vpack.c.bf16 %v1251_v51, %v1250_v50  ;;  %v1965_v17 = vpack.c.bf16 %v1279_v16, %v1278_v15  ;;  %v1281_v19 = vld [vmem:[%s2689_s2 + $0x228] sm:$0xff]  ;;  %v1262_v26 = vld [vmem:[%s2689_s2 + $0x190] sm:$0xff]  ;;  %v1284_v30 = vld [vmem:[%s2689_s2 + $0x240] sm:$0xff] }
 0x105   :  { %vm412_vm5 = vcmp.ge.f32.partialorder %v407_v27, 0.0  ;;  %v422_v31 = vmul.f32 %v2362_v60, %v407_v27  ;;  %v398_v32 = vadd.f32 %v386_v23, %v268_v28  ;;  %1942 = vmatpush3.bf16.msra.mxu1 %v1941_v21  ;;  %1609 = vmatprep.mubr.msk.f32.mxu1 %vm2046_vm2, %v2045_v4  ;;  %v1261_v21 = vld [vmem:[%s2689_s2 + $0x188] sm:$0xff]  ;;  %v1968_v22 = vpack.c.bf16 %v1281_v19, %v1280_v18  ;;  %v1270_v50 = vld [vmem:[%s2689_s2 + $0x1d0] sm:$0xff]  ;;  %v1271_v51 = vld [vmem:[%s2689_s2 + $0x1d8] sm:$0xff] }
 0x106   :  { %v272_v34 = vpop.f32.mrb[10].mxu1  ;;  %v391_v35 = vpop.f32.mrb[16].mxu0  ;;  %1943 = vmatprep.subr.bf16.mxu1 %v2044_v0  ;;  %v1986_v23 = vpack.c.bf16 %v1261_v21, %v1260_v20  ;;  %v1971_v28 = vpack.c.bf16 %v1283_v25, %v1282_v24  ;;  %v1258_v24 = vld [vmem:[%s2690_s3 + $0x1] ss:$0 sm:$0xff] }
 0x107   :  { %v427_v38 = vsel %vm412_vm5, %v407_v27, %v422_v31  ;;  %v408_v39 = vadd.f32 %v2357_v58, %v398_v32  ;;  %v273_v40 = vadd.f32 %v272_v34, %v2352_v43  ;;  %v435_v41 = vld [vmem:[#allocation3] sm:$0xff]  ;;  %v1539_v42 = vpop.f32.mrb[11].mxu1  ;;  %v1570_v44 = vpop.f32.mrb[17].mxu0  ;;  %v1263_v27 = vld [vmem:[%s2689_s2 + $0x198] sm:$0xff]  ;;  %v1264_v32 = vld [vmem:[%s2689_s2 + $0x1a0] sm:$0xff] }
 0x108   :  { %432 = vst [vmem:[#allocation3 + $0x11] sm:$0xfc] %v427_v38  ;;  %1651 = vmatmul.mubr.f32.vlgmr.msra.gmra.mrb[18].mxu0 %v435_v41  ;;  %v1989_v29 = vpack.c.bf16 %v1263_v27, %v1262_v26  ;;  %v1285_v31 = vld [vmem:[%s2689_s2 + $0x248] sm:$0xff]  ;;  %v1995_v38 = vpack.c.bf16 %v1267_v37, %v1266_v36  ;;  %v1288_v42 = vld [vmem:[%s2689_s2 + $0x260] sm:$0xff]  ;;  %v1294_v36 = vld [vmem:[%s2689_s2 + $0x290] sm:$0xff] }
 0x109   :  { %vm413_vm6 = vcmp.ge.f32.partialorder %v408_v39, 0.0  ;;  %v423_v45 = vmul.f32 %v2362_v60, %v408_v39  ;;  %v399_v46 = vadd.f32 %v391_v35, %v273_v40  ;;  %1653 = vmatprep.mubr.msk.f32.mxu0 %vm2046_vm2, %v2045_v4  ;;  %1945 = vmatpush3.bf16.msra.mxu1 %v1944_v33  ;;  %v1265_v33 = vld [vmem:[%s2689_s2 + $0x1a8] sm:$0xff]  ;;  %v1974_v34 = vpack.c.bf16 %v1285_v31, %v1284_v30  ;;  %v1287_v40 = vld [vmem:[%s2689_s2 + $0x258] sm:$0xff]  ;;  %v2578_v27 = vld [vmem:[%s2691_s4 + $0x1] ss:$0 sm:$0xff] }
 0x10a   :  { %1946 = vmatprep.subr.bf16.mxu1 %v2044_v0  ;;  %1963 = vmatpush3.bf16.msra.mxu0 %v1962_v14  ;;  %v1992_v35 = vpack.c.bf16 %v1265_v33, %v1264_v32  ;;  %v1289_v44 = vld [vmem:[%s2689_s2 + $0x268] sm:$0xff]  ;;  %v1295_v37 = vld [vmem:[%s2689_s2 + $0x298] sm:$0xff] }
 0x10b   :  { %v428_v48 = vsel %vm413_vm6, %v408_v39, %v423_v45  ;;  %v409_v49 = vadd.f32 %v2357_v58, %v399_v46  ;;  %v436_v43 = vld [vmem:[#allocation3 + $0x8] sm:$0xff]  ;;  %v1253_v58 = vld [vmem:[%s2689_s2 + $0x158] sm:$0xff]  ;;  %1964 = vmatprep.subr.bf16.mxu0 %v2044_v0  ;;  %v1268_v45 = vld [vmem:[%s2689_s2 + $0x1c0] sm:$0xff] }
 0x10c   :  { %433 = vst [vmem:[#allocation3 + $0x19] sm:$0xff] %v428_v48  ;;  %1654 = vmatmul.mubr.f32.gmra.mrb[20].mxu0 %v436_v43  ;;  %v1953_v59 = vpack.c.bf16 %v1253_v58, %v1252_v54  ;;  %v658_v7 = vld [vmem:[#allocation3 + $0x2] sm:$0xff]  ;;  %v659_v8 = vld [vmem:[#allocation3 + $0xa] sm:$0xff]  ;;  %v1272_v54 = vld [vmem:[%s2689_s2 + $0x1e0] sm:$0xff] }
 0x10d   :  { %vm414_vm7 = vcmp.ge.f32.partialorder %v409_v49, 0.0  ;;  %v424_v52 = vmul.f32 %v2362_v60, %v409_v49  ;;  %1656 = vmatprep.mubr.msk.f32.mxu0 %vm2046_vm2, %v2045_v4  ;;  %1948 = vmatpush3.bf16.msra.mxu1 %v1947_v47  ;;  %v1286_v39 = vld [vmem:[%s2689_s2 + $0x250] sm:$0xff]  ;;  %v1269_v46 = vld [vmem:[%s2689_s2 + $0x1c8] sm:$0xff]  ;;  %v1980_v47 = vpack.c.bf16 %v1289_v44, %v1288_v42  ;;  %v1291_v43 = vld [vmem:[%s2689_s2 + $0x278] sm:$0xff] }
 0x10e   :  { %1949 = vmatprep.subr.bf16.mxu1 %v2044_v0  ;;  %1966 = vmatpush3.bf16.msra.mxu0 %v1965_v17  ;;  %v1977_v41 = vpack.c.bf16 %v1287_v40, %v1286_v39  ;;  %v1275_v58 = vld [vmem:[%s2689_s2 + $0x1f8] sm:$0xff] }
 0x10f   :  { %v429_v55 = vsel %vm414_vm7, %v409_v49, %v424_v52  ;;  %v458_v56 = vld [vmem:[#allocation3 + $0x11] sm:$0xff]  ;;  %1967 = vmatprep.subr.bf16.mxu0 %v2044_v0  ;;  %v1290_v49 = vld [vmem:[%s2689_s2 + $0x270] sm:$0xff] }
 0x110   :  { %v437_v57 = vld [vmem:[#allocation3 + $0x10] sm:$0xff]  ;;  %434 = vst [vmem:[#allocation3 + $0x21] sm:$0x3] %v429_v55  ;;  %1610 = vmatmul.mubr.f32.gmra.mrb[16].mxu1 %v458_v56  ;;  %v1983_v52 = vpack.c.bf16 %v1291_v43, %v1290_v49  ;;  %v1273_v55 = vld [vmem:[%s2689_s2 + $0x1e8] sm:$0xff] }
 0x111   :  { %1657 = vmatmul.mubr.f32.gmra.mrb[22].mxu0 %v437_v57  ;;  %1612 = vmatprep.mubr.msk.f32.mxu1 %vm2046_vm2, %v2045_v4  ;;  %v2004_v56 = vpack.c.bf16 %v1273_v55, %v1272_v54  ;;  %v1274_v57 = vld [vmem:[%s2689_s2 + $0x1f0] sm:$0xff]  ;;  %v1299_v55 = vld [vmem:[%s2689_s2 + $0x2b8] sm:$0xff] }
 0x112   :  { %1659 = vmatprep.mubr.msk.f32.mxu0 %vm2046_vm2, %v2045_v4  ;;  %1951 = vmatpush3.bf16.msra.mxu1 %v1950_v53  ;;  %v2001_v53 = vpack.c.bf16 %v1271_v51, %v1270_v50  ;;  %v1298_v54 = vld [vmem:[%s2689_s2 + $0x2b0] sm:$0xff] }
 0x113   :  { %v438_v60 = vld [vmem:[#allocation3 + $0x18] sm:$0xff]  ;;  %1952 = vmatprep.subr.bf16.mxu1 %v2044_v0  ;;  %1969 = vmatpush3.bf16.msra.mxu0 %v1968_v22 }
 0x114   :  { %1613 = vmatmul.mubr.f32.gmra.mrb[18].mxu1 %v428_v48  ;;  %v660_v9 = vld [vmem:[#allocation3 + $0x12] sm:$0xff]  ;;  %1970 = vmatprep.subr.bf16.mxu0 %v2044_v0  ;;  %v1998_v48 = vpack.c.bf16 %v1269_v46, %v1268_v45  ;;  %v2013_v45 = vpack.c.bf16 %v1295_v37, %v1294_v36 }
 0x115   :  { %1660 = vmatmul.mubr.f32.gmra.mrb[24].mxu0 %v438_v60  ;;  %1615 = vmatprep.mubr.msk.f32.mxu1 %vm2046_vm2, %v2045_v4  ;;  %v1296_v46 = vld [vmem:[%s2689_s2 + $0x2a0] sm:$0xff] }
 0x116   :  { %1662 = vmatprep.mubr.msk.f32.mxu0 %vm2046_vm2, %v2045_v4  ;;  %1954 = vmatpush3.bf16.msra.mxu1 %v1953_v59  ;;  %v2007_v59 = vpack.c.bf16 %v1275_v58, %v1274_v57 }
 0x117   :  { %v460_v2 = vld [vmem:[#allocation3 + $0x21] sm:$0x3]  ;;  %1955 = vmatprep.subr.bf16.mxu1 %v2044_v0  ;;  %1972 = vmatpush3.bf16.msra.mxu0 %v1971_v28  ;;  %v1292_v28 = vld [vmem:[%s2689_s2 + $0x280] sm:$0xff] }
 0x118   :  { %v439_v3 = vld [vmem:[#allocation3 + $0x20] sm:$0x3]  ;;  %1616 = vmatmul.mubr.f32.gmra.mrb[20].mxu1 %v460_v2  ;;  %v662_v11 = vld [vmem:[#allocation3 + $0x22] sm:$0x3]  ;;  %1973 = vmatprep.subr.bf16.mxu0 %v2044_v0 }
 0x119   :  { %1663 = vmatmul.mubr.f32.gmra.mrb[26].mxu0 %v439_v3  ;;  %1697 = vmatprep.mubr.msk.f32.mxu1 %vm2046_vm2, %v2045_v4  ;;  %v661_v10 = vld [vmem:[#allocation3 + $0x1a] sm:$0xff] }
 0x11a   :  { %1744 = vmatprep.mubr.msk.f32.mxu0 %vm2046_vm2, %v2045_v4  ;;  %1957 = vmatpush3.bf16.msra.mxu1 %v1956_v63 }
 0x11b   :  { %1958 = vmatprep.subr.bf16.mxu1 %v2044_v0  ;;  %1975 = vmatpush3.bf16.msra.mxu0 %v1974_v34 }
 0x11c   :  { %1976 = vmatprep.subr.bf16.mxu0 %v2044_v0 }
 0x11e   :  { %1960 = vmatpush3.bf16.msra.mxu1 %v1959_v6 }
 0x11f   :  { %1985 = vmatprep.subr.bf16.mxu1 %v2044_v0  ;;  %1978 = vmatpush3.bf16.msra.mxu0 %v1977_v41 }
 0x120   :  { %1979 = vmatprep.subr.bf16.mxu0 %v2044_v0 }
 0x121   :  { %1698 = vmatmul.mubr.f32.vlgmr.msra.gmra.mrb[22].mxu1 %v658_v7 }
 0x122   :  { %1700 = vmatprep.mubr.msk.f32.mxu1 %vm2046_vm2, %v2045_v4  ;;  %1987 = vmatpush3.bf16.msra.mxu1 %v1986_v23 }
 0x123   :  { %1988 = vmatprep.subr.bf16.mxu1 %v2044_v0  ;;  %1981 = vmatpush3.bf16.msra.mxu0 %v1980_v47  ;;  %v1297_v47 = vld [vmem:[%s2689_s2 + $0x2a8] sm:$0xff] }
 0x124   :  { %1982 = vmatprep.subr.bf16.mxu0 %v2044_v0 }
 0x125   :  { %1701 = vmatmul.mubr.f32.gmra.mrb[24].mxu1 %v659_v8 }
 0x126   :  { %1703 = vmatprep.mubr.msk.f32.mxu1 %vm2046_vm2, %v2045_v4  ;;  %1990 = vmatpush3.bf16.msra.mxu1 %v1989_v29  ;;  %v1293_v29 = vld [vmem:[%s2689_s2 + $0x288] sm:$0xff] }
 0x127   :  { %1991 = vmatprep.subr.bf16.mxu1 %v2044_v0  ;;  %1984 = vmatpush3.bf16.msra.mxu0 %v1983_v52 }
 0x128   :  { %2009 = vmatprep.subr.bf16.mxu0 %v2044_v0 }
 0x129   :  { %1704 = vmatmul.mubr.f32.gmra.mrb[26].mxu1 %v660_v9 }
 0x12a   :  { %1706 = vmatprep.mubr.msk.f32.mxu1 %vm2046_vm2, %v2045_v4  ;;  %1993 = vmatpush3.bf16.msra.mxu1 %v1992_v35  ;;  %v2010_v35 = vpack.c.bf16 %v1293_v29, %v1292_v28 }
 0x12b   :  { %1994 = vmatprep.subr.bf16.mxu1 %v2044_v0 }
 0x12d   :  { %1707 = vmatmul.mubr.f32.gmra.mrb[28].mxu1 %v661_v10 }
 0x12e   :  { %1709 = vmatprep.mubr.msk.f32.mxu1 %vm2046_vm2, %v2045_v4  ;;  %1996 = vmatpush3.bf16.msra.mxu1 %v1995_v38 }
 0x12f   :  { %1997 = vmatprep.subr.bf16.mxu1 %v2044_v0 }
 0x131   :  { %1710 = vmatmul.mubr.f32.gmra.mrb[30].mxu1 %v662_v11 }
 0x132   :  { %1791 = vmatprep.mubr.msk.f32.mxu1 %vm2046_vm2, %v2045_v4  ;;  %1999 = vmatpush3.bf16.msra.mxu1 %v1998_v48 }
 0x133   :  { %2000 = vmatprep.subr.bf16.mxu1 %v2044_v0 }
 0x136   :  { %2002 = vmatpush3.bf16.msra.mxu1 %v2001_v53  ;;  %v2016_v53 = vpack.c.bf16 %v1297_v47, %v1296_v46 }
 0x137   :  { %2003 = vmatprep.subr.bf16.mxu1 %v2044_v0 }
 0x13a   :  { %2005 = vmatpush3.bf16.msra.mxu1 %v2004_v56 }
 0x13b   :  { %2006 = vmatprep.subr.bf16.mxu1 %v2044_v0 }
 0x13e   :  { %2008 = vmatpush3.bf16.msra.mxu1 %v2007_v59 }
 0x1d3   :  { %v544_v60 = vpop.f32.mrb[12].mxu1 }
 0x1d4   :  { %v1605_v61 = vpop.f32.mrb[13].mxu1 }
 0x1d7   :  { %v549_v62 = vpop.f32.mrb[14].mxu1 }
 0x1d8   :  { %v1608_v63 = vpop.f32.mrb[15].mxu1 }
 0x1d9   :  { %v2019_v63 = vpack.c.bf16 %v1299_v55, %v1298_v54 }
 0x1db   :  { %v634_v1 = vpop.f32.mrb[18].mxu0 }
 0x1dc   :  { %v635_v2 = vadd.f32 %v634_v1, %v544_v60  ;;  %v1652_v3 = vpop.f32.mrb[19].mxu0 }
 0x1df   :  { %v639_v5 = vpop.f32.mrb[20].mxu0 }
 0x1e0   :  { %v640_v6 = vadd.f32 %v639_v5, %v549_v62  ;;  %v1655_v7 = vpop.f32.mrb[21].mxu0  ;;  %v1300_v5 = vld [vmem:[%s2689_s2 + $0x2c0] sm:$0xff] }
 0x1e3   :  { %v554_v8 = vpop.f32.mrb[16].mxu1 }
 0x1e4   :  { %v644_v9 = vpop.f32.mrb[22].mxu0  ;;  %v1611_v11 = vpop.f32.mrb[17].mxu1 }
 0x1e5   :  { %v645_v10 = vadd.f32 %v644_v9, %v554_v8  ;;  %v1658_v12 = vpop.f32.mrb[23].mxu0  ;;  %v1302_v9 = vld [vmem:[%s2689_s2 + $0x2d0] sm:$0xff] }
 0x1e7   :  { %v559_v13 = vpop.f32.mrb[18].mxu1 }
 0x1e8   :  { %v649_v14 = vpop.f32.mrb[24].mxu0  ;;  %v1614_v16 = vpop.f32.mrb[19].mxu1 }
 0x1e9   :  { %v650_v15 = vadd.f32 %v649_v14, %v559_v13  ;;  %v1661_v17 = vpop.f32.mrb[25].mxu0  ;;  %v1303_v13 = vld [vmem:[%s2689_s2 + $0x2d8] sm:$0xff]  ;;  %v1304_v16 = vld [vmem:[%s2689_s2 + $0x2e0] sm:$0xff] }
 0x1ea   :  { %v2025_v14 = vpack.c.bf16 %v1303_v13, %v1302_v9  ;;  %v1305_v17 = vld [vmem:[%s2689_s2 + $0x2e8] sm:$0xff] }
 0x1eb   :  { %v564_v18 = vpop.f32.mrb[20].mxu1 }
 0x1ec   :  { %v654_v19 = vpop.f32.mrb[26].mxu0  ;;  %v1617_v21 = vpop.f32.mrb[21].mxu1 }
 0x1ed   :  { %v655_v20 = vadd.f32 %v654_v19, %v564_v18  ;;  %v1664_v22 = vpop.f32.mrb[27].mxu0  ;;  %v2028_v18 = vpack.c.bf16 %v1305_v17, %v1304_v16  ;;  %v1306_v19 = vld [vmem:[%s2689_s2 + $0x2f0] sm:$0xff] }
 0x1ee   :  { %v1307_v22 = vld [vmem:[%s2689_s2 + $0x2f8] sm:$0xff] }
 0x1f4   :  { %v746_v23 = vpop.f32.mrb[22].mxu1 }
 0x1f5   :  { %v770_v25 = vadd.f32 %v746_v23, %v635_v2  ;;  %v1699_v26 = vpop.f32.mrb[23].mxu1  ;;  %v2031_v23 = vpack.c.bf16 %v1307_v22, %v1306_v19 }
 0x1f7   :  { %v780_v30 = vadd.f32 %v1258_v24, %v770_v25 }
 0x1f8   :  { %v751_v31 = vpop.f32.mrb[24].mxu1 }
 0x1f9   :  { %vm785_vm8 = vcmp.ge.f32.partialorder %v780_v30, 0.0  ;;  %v795_v32 = vmul.f32 %v2578_v27, %v780_v30  ;;  %v771_v33 = vadd.f32 %v751_v31, %v640_v6  ;;  %v1702_v34 = vpop.f32.mrb[25].mxu1  ;;  %v1301_v6 = vld [vmem:[%s2689_s2 + $0x2c8] sm:$0xff] }
 0x1fa   :  { %v2022_v8 = vpack.c.bf16 %v1301_v6, %v1300_v5 }
 0x1fb   :  { %v800_v38 = vsel %vm785_vm8, %v780_v30, %v795_v32  ;;  %v781_v39 = vadd.f32 %v1258_v24, %v771_v33 }
 0x1fc   :  { %805 = vst [vmem:[#allocation3 + $0x1] sm:$0xff] %v800_v38  ;;  %v756_v40 = vpop.f32.mrb[26].mxu1  ;;  %1745 = vmatmul.mubr.f32.vlgmr.msra.gmra.mrb[28].mxu0 %v800_v38 }
 0x1fd   :  { %vm786_vm9 = vcmp.ge.f32.partialorder %v781_v39, 0.0  ;;  %v796_v41 = vmul.f32 %v2578_v27, %v781_v39  ;;  %v772_v42 = vadd.f32 %v756_v40, %v645_v10  ;;  %v1705_v44 = vpop.f32.mrb[27].mxu1  ;;  %2011 = vmatpush3.bf16.msra.mxu0 %v2010_v35  ;;  %1747 = vmatprep.mubr.msk.f32.mxu0 %vm2046_vm2, %v2045_v4 }
 0x1fe   :  { %2012 = vmatprep.subr.bf16.mxu0 %v2044_v0 }
 0x1ff   :  { %v801_v48 = vsel %vm786_vm9, %v781_v39, %v796_v41  ;;  %v782_v49 = vadd.f32 %v1258_v24, %v772_v42 }
 0x200   :  { %806 = vst [vmem:[#allocation3 + $0x9] sm:$0xff] %v801_v48  ;;  %v761_v43 = vpop.f32.mrb[28].mxu1  ;;  %1748 = vmatmul.mubr.f32.gmra.mrb[30].mxu0 %v801_v48 }
 0x201   :  { %vm787_vm10 = vcmp.ge.f32.partialorder %v782_v49, 0.0  ;;  %v797_v50 = vmul.f32 %v2578_v27, %v782_v49  ;;  %v773_v51 = vadd.f32 %v761_v43, %v650_v15  ;;  %v1708_v52 = vpop.f32.mrb[29].mxu1  ;;  %2014 = vmatpush3.bf16.msra.mxu0 %v2013_v45  ;;  %1750 = vmatprep.mubr.msk.f32.mxu0 %vm2046_vm2, %v2045_v4 }
 0x202   :  { %2015 = vmatprep.subr.bf16.mxu0 %v2044_v0 }
 0x203   :  { %v802_v56 = vsel %vm787_vm10, %v782_v49, %v797_v50  ;;  %v783_v57 = vadd.f32 %v1258_v24, %v773_v51  ;;  %v810_v58 = vld [vmem:[#allocation3] sm:$0xff] }
 0x204   :  { %807 = vst [vmem:[#allocation3 + $0x11] sm:$0xfc] %v802_v56  ;;  %v766_v59 = vpop.f32.mrb[30].mxu1  ;;  %1792 = vmatmul.mubr.f32.vlgmr.msra.gmra.mrb[32].mxu1 %v810_v58  ;;  %v1309_v56 = vld [vmem:[%s2691_s4 + $0x2] ss:$0 sm:$0xff] }
 0x205   :  { %vm788_vm11 = vcmp.ge.f32.partialorder %v783_v57, 0.0  ;;  %v798_v60 = vmul.f32 %v2578_v27, %v783_v57  ;;  %v774_v61 = vadd.f32 %v766_v59, %v655_v20  ;;  %v1711_v62 = vpop.f32.mrb[31].mxu1  ;;  %1794 = vmatprep.mubr.msk.f32.mxu1 %vm2046_vm2, %v2045_v4  ;;  %2017 = vmatpush3.bf16.msra.mxu0 %v2016_v53  ;;  %v1308_v53 = vld [vmem:[%s2690_s3 + $0x2] ss:$0 sm:$0xff] }
 0x206   :  { %2018 = vmatprep.subr.bf16.mxu0 %v2044_v0 }
 0x207   :  { %v803_v1 = vsel %vm788_vm11, %v783_v57, %v798_v60  ;;  %v784_v2 = vadd.f32 %v1258_v24, %v774_v61  ;;  %v811_v3 = vld [vmem:[#allocation3 + $0x8] sm:$0xff] }
 0x208   :  { %808 = vst [vmem:[#allocation3 + $0x19] sm:$0xff] %v803_v1  ;;  %1795 = vmatmul.mubr.f32.gmra.mrb[34].mxu1 %v811_v3  ;;  %v1034_v24 = vld [vmem:[#allocation3 + $0x2] sm:$0xff]  ;;  %v1035_v25 = vld [vmem:[#allocation3 + $0xa] sm:$0xff] }
 0x209   :  { %vm789_vm12 = vcmp.ge.f32.partialorder %v784_v2, 0.0  ;;  %v799_v7 = vmul.f32 %v2578_v27, %v784_v2  ;;  %1797 = vmatprep.mubr.msk.f32.mxu1 %vm2046_vm2, %v2045_v4  ;;  %2020 = vmatpush3.bf16.msra.mxu0 %v2019_v63 }
 0x20a   :  { %2021 = vmatprep.subr.bf16.mxu0 %v2044_v0 }
 0x20b   :  { %v804_v10 = vsel %vm789_vm12, %v784_v2, %v799_v7  ;;  %v834_v11 = vld [vmem:[#allocation3 + $0x11] sm:$0xff] }
 0x20c   :  { %v812_v12 = vld [vmem:[#allocation3 + $0x10] sm:$0xff]  ;;  %809 = vst [vmem:[#allocation3 + $0x21] sm:$0x3] %v804_v10  ;;  %1751 = vmatmul.mubr.f32.gmra.mrb[32].mxu0 %v834_v11 }
 0x20d   :  { %1798 = vmatmul.mubr.f32.gmra.mrb[36].mxu1 %v812_v12  ;;  %1753 = vmatprep.mubr.msk.f32.mxu0 %vm2046_vm2, %v2045_v4 }
 0x20e   :  { %1800 = vmatprep.mubr.msk.f32.mxu1 %vm2046_vm2, %v2045_v4  ;;  %2023 = vmatpush3.bf16.msra.mxu0 %v2022_v8 }
 0x20f   :  { %v813_v15 = vld [vmem:[#allocation3 + $0x18] sm:$0xff]  ;;  %2024 = vmatprep.subr.bf16.mxu0 %v2044_v0 }
 0x210   :  { %1754 = vmatmul.mubr.f32.gmra.mrb[34].mxu0 %v803_v1  ;;  %v1036_v26 = vld [vmem:[#allocation3 + $0x12] sm:$0xff] }
 0x211   :  { %1801 = vmatmul.mubr.f32.gmra.mrb[38].mxu1 %v813_v15  ;;  %1756 = vmatprep.mubr.msk.f32.mxu0 %vm2046_vm2, %v2045_v4 }
 0x212   :  { %1803 = vmatprep.mubr.msk.f32.mxu1 %vm2046_vm2, %v2045_v4  ;;  %2026 = vmatpush3.bf16.msra.mxu0 %v2025_v14 }
 0x213   :  { %v836_v20 = vld [vmem:[#allocation3 + $0x21] sm:$0x3]  ;;  %2027 = vmatprep.subr.bf16.mxu0 %v2044_v0 }
 0x214   :  { %v814_v21 = vld [vmem:[#allocation3 + $0x20] sm:$0x3]  ;;  %1757 = vmatmul.mubr.f32.gmra.mrb[36].mxu0 %v836_v20 }
 0x215   :  { %1804 = vmatmul.mubr.f32.gmra.mrb[40].mxu1 %v814_v21  ;;  %1838 = vmatprep.mubr.msk.f32.mxu0 %vm2046_vm2, %v2045_v4  ;;  %v1037_v27 = vld [vmem:[#allocation3 + $0x1a] sm:$0xff] }
 0x216   :  { %2029 = vmatpush3.bf16.msra.mxu0 %v2028_v18 }
 0x217   :  { %2030 = vmatprep.subr.bf16.mxu0 %v2044_v0  ;;  %v1038_v0 = vld [vmem:[#allocation3 + $0x22] sm:$0x3] }
 0x21a   :  { %2032 = vmatpush3.bf16.msra.mxu0 %v2031_v23 }
 0x21d   :  { %1839 = vmatmul.mubr.f32.vlgmr.msra.gmra.mrb[38].mxu0 %v1034_v24 }
 0x21e   :  { %1841 = vmatprep.mubr.msk.f32.mxu0 %vm2046_vm2, %v2045_v4 }
 0x221   :  { %1842 = vmatmul.mubr.f32.gmra.mrb[40].mxu0 %v1035_v25 }
 0x222   :  { %1844 = vmatprep.mubr.msk.f32.mxu0 %vm2046_vm2, %v2045_v4 }
 0x225   :  { %1845 = vmatmul.mubr.f32.gmra.mrb[42].mxu0 %v1036_v26 }
 0x226   :  { %1847 = vmatprep.mubr.msk.f32.mxu0 %vm2046_vm2, %v2045_v4 }
 0x229   :  { %1848 = vmatmul.mubr.f32.gmra.mrb[44].mxu0 %v1037_v27 }
 0x22a   :  { %1850 = vmatprep.mubr.msk.f32.mxu0 %vm2046_vm2, %v2045_v4 }
 0x22d   :  { %1851 = vmatmul.mubr.f32.gmra.mrb[46].mxu0 %v1038_v0 }
 0x2cf   :  { %v920_v28 = vpop.f32.mrb[28].mxu0 }
 0x2d0   :  { %v1746_v29 = vpop.f32.mrb[29].mxu0 }
 0x2d3   :  { %v925_v30 = vpop.f32.mrb[30].mxu0 }
 0x2d4   :  { %v1749_v31 = vpop.f32.mrb[31].mxu0 }
 0x2d7   :  { %v1010_v32 = vpop.f32.mrb[32].mxu1 }
 0x2d8   :  { %v1011_v33 = vadd.f32 %v1010_v32, %v920_v28  ;;  %v1793_v34 = vpop.f32.mrb[33].mxu1 }
 0x2db   :  { %v1015_v35 = vpop.f32.mrb[34].mxu1 }
 0x2dc   :  { %v1016_v36 = vadd.f32 %v1015_v35, %v925_v30  ;;  %v1796_v37 = vpop.f32.mrb[35].mxu1 }
 0x2df   :  { %v930_v38 = vpop.f32.mrb[32].mxu0 }
 0x2e0   :  { %v1020_v39 = vpop.f32.mrb[36].mxu1  ;;  %v1752_v41 = vpop.f32.mrb[33].mxu0 }
 0x2e1   :  { %v1021_v40 = vadd.f32 %v1020_v39, %v930_v38  ;;  %v1799_v42 = vpop.f32.mrb[37].mxu1 }
 0x2e3   :  { %v935_v44 = vpop.f32.mrb[34].mxu0 }
 0x2e4   :  { %v1025_v45 = vpop.f32.mrb[38].mxu1  ;;  %v1755_v46 = vpop.f32.mrb[35].mxu0 }
 0x2e5   :  { %v1026_v4 = vadd.f32 %v1025_v45, %v935_v44  ;;  %v1802_v47 = vpop.f32.mrb[39].mxu1 }
 0x2e7   :  { %v940_v48 = vpop.f32.mrb[36].mxu0 }
 0x2e8   :  { %v1030_v49 = vpop.f32.mrb[40].mxu1  ;;  %v1758_v50 = vpop.f32.mrb[37].mxu0 }
 0x2e9   :  { %v1031_v43 = vadd.f32 %v1030_v49, %v940_v48  ;;  %v1805_v51 = vpop.f32.mrb[41].mxu1 }
 0x2f0   :  { %v1122_v52 = vpop.f32.mrb[38].mxu0 }
 0x2f1   :  { %v1146_v54 = vadd.f32 %v1122_v52, %v1011_v33  ;;  %v1840_v55 = vpop.f32.mrb[39].mxu0 }
 0x2f3   :  { %v1156_v57 = vadd.f32 %v1308_v53, %v1146_v54 }
 0x2f4   :  { %v1127_v58 = vpop.f32.mrb[40].mxu0 }
 0x2f5   :  { %vm1161_vm13 = vcmp.ge.f32.partialorder %v1156_v57, 0.0  ;;  %v1171_v59 = vmul.f32 %v1309_v56, %v1156_v57  ;;  %v1147_v60 = vadd.f32 %v1127_v58, %v1016_v36  ;;  %v1843_v61 = vpop.f32.mrb[41].mxu0 }
 0x2f7   :  { %v1176_v62 = vsel %vm1161_vm13, %v1156_v57, %v1171_v59  ;;  %v1157_v63 = vadd.f32 %v1308_v53, %v1147_v60 }
 0x2f8   :  { %1181 = vst [vmem:[%s2692_s5] sm:$0xff] %v1176_v62  ;;  %v1132_v1 = vpop.f32.mrb[42].mxu0 }
 0x2f9   :  { %vm1162_vm14 = vcmp.ge.f32.partialorder %v1157_v63, 0.0  ;;  %v1172_v2 = vmul.f32 %v1309_v56, %v1157_v63  ;;  %v1148_v3 = vadd.f32 %v1132_v1, %v1021_v40  ;;  %v1846_v5 = vpop.f32.mrb[43].mxu0 }
 0x2fb   :  { %v1177_v6 = vsel %vm1162_vm14, %v1157_v63, %v1172_v2  ;;  %v1158_v7 = vadd.f32 %v1308_v53, %v1148_v3 }
 0x2fc   :  { %1182 = vst [vmem:[%s2692_s5 + $0x8] sm:$0xff] %v1177_v6  ;;  %v1137_v8 = vpop.f32.mrb[44].mxu0 }
 0x2fd   :  { %vm1163_vm15 = vcmp.ge.f32.partialorder %v1158_v7, 0.0  ;;  %v1173_v9 = vmul.f32 %v1309_v56, %v1158_v7  ;;  %v1149_v10 = vadd.f32 %v1137_v8, %v1026_v4  ;;  %v1849_v11 = vpop.f32.mrb[45].mxu0 }
 0x2ff   :  { %v1178_v12 = vsel %vm1163_vm15, %v1158_v7, %v1173_v9  ;;  %v1159_v13 = vadd.f32 %v1308_v53, %v1149_v10 }
 0x300   :  { %1310 = vst [vmem:[%s2692_s5 + $0xe] sm:$0xfc] %v1178_v12  ;;  %v1142_v14 = vpop.f32.mrb[46].mxu0 }
 0x301   :  { %vm1164_vm0 = vcmp.ge.f32.partialorder %v1159_v13, 0.0  ;;  %v1174_v15 = vmul.f32 %v1309_v56, %v1159_v13  ;;  %v1150_v16 = vadd.f32 %v1142_v14, %v1031_v43  ;;  %v1852_v17 = vpop.f32.mrb[47].mxu0 }
 0x303   :  { %v1179_v18 = vsel %vm1164_vm0, %v1159_v13, %v1174_v15  ;;  %v1160_v19 = vadd.f32 %v1308_v53, %v1150_v16 }
 0x304   :  { %1311 = vst [vmem:[%s2692_s5 + $0x16] sm:$0xff] %v1179_v18 }
 0x305   :  { %vm1165_vm1 = vcmp.ge.f32.partialorder %v1160_v19, 0.0  ;;  %v1175_v20 = vmul.f32 %v1309_v56, %v1160_v19 }
 0x307   :  { %v1180_v21 = vsel %vm1165_vm1, %v1160_v19, %v1175_v20 }
 0x308   :  { %1312 = vst [vmem:[%s2692_s5 + $0x1e] sm:$0x3] %v1180_v21 }

</bundles_post_ra>
